<compile_context>
chip_gen: v5e
topology: v5e:2x2
jax: 0.10.0
libtpu: 0.0.40
codegen_flags: <defaults>
</compile_context>

<pallas_src>
import jax
import jax.numpy as jnp
from jax import lax
from jax.experimental import pallas as pl
from jax.experimental.pallas import tpu as pltpu
import numpy as np


def bottleneck_kernel(x_ref, w1_ref, b1_ref, w2_ref, b2_ref, w3_ref, b3_ref,
                      out_ref):
    """One grid step = one batch element, whole H x W image, NHWC, bf16 I/O."""
    _, H, W, Cin = x_ref.shape
    Wd = w1_ref.shape[1]
    Cout = w3_ref.shape[1]

    x2d = x_ref[0].reshape(H * W, Cin)                        # bf16

    # ---- conv1 (1x1, BN1 scale folded into w1) + bias + ReLU
    h1 = jnp.dot(x2d, w1_ref[...], preferred_element_type=jnp.float32)
    h1 = jnp.maximum(h1 + b1_ref[...], 0.0)                   # (H*W, Wd) f32
    h1 = h1.reshape(H, W, Wd).astype(jnp.bfloat16)

    # ---- conv2 (3x3, stride 1, pad 1, BN2 scale folded into w2)
    # Zero-pad one row top/bottom on the narrow Wd-channel bf16 tensor (this
    # replaces the old f32/Cin halo concat: ~8x less data), build the two
    # column-shifted copies once, concat along channels; the conv becomes
    # three matmuls with K = 3*Wd whose dy taps are free leading-dim slices.
    # TODO(synk): the column shifts could use pltpu.roll (XLU) + a hoisted
    #             column mask instead of slice+concat copies (v5e vst relief).
    zrow = jnp.zeros((1, W, Wd), jnp.bfloat16)
    h1p = jnp.concatenate([zrow, h1, zrow], axis=0)           # (H+2, W, Wd)
    zcol = jnp.zeros((H + 2, 1, Wd), jnp.bfloat16)
    s_l = jnp.concatenate([zcol, h1p[:, :W - 1, :]], axis=1)  # h1p[y, x-1]
    s_r = jnp.concatenate([h1p[:, 1:, :], zcol], axis=1)      # h1p[y, x+1]
    s_cat = jnp.concatenate([s_l, h1p, s_r], axis=-1)         # (H+2, W, 3*Wd)

    acc = jnp.zeros((H * W, Wd), jnp.float32)
    for ky in range(3):                                       # static unroll
        tap = s_cat[ky:ky + H].reshape(H * W, 3 * Wd)
        acc = acc + jnp.dot(tap, w2_ref[ky],
                            preferred_element_type=jnp.float32)
    h2 = jnp.maximum(acc + b2_ref[...], 0.0)                  # (H*W, Wd) f32

    # ---- conv3 (1x1, BN3 scale folded into w3) + bias
    h3 = jnp.dot(h2.astype(jnp.bfloat16), w3_ref[...],
                 preferred_element_type=jnp.float32)
    h3 = h3 + b3_ref[...]                                     # (H*W, Cout)

    # ---- residual (downsample=None => identity = x, Cin == Cout) + ReLU
    out = jnp.maximum(h3 + x2d.astype(jnp.float32), 0.0)
    out_ref[0] = out.reshape(H, W, Cout).astype(out_ref.dtype)


def bottleneck_forward(x_nhwc, params):
    """x_nhwc: (N, H, W, Cin), any float dtype (cast to bf16 once here).
    Returns (N, H, W, Cout) bf16, NHWC end-to-end."""
    w1, b1, w2, b2, w3, b3 = params
    N, H, W, Cin = x_nhwc.shape
    Wd = w1.shape[1]
    Cout = w3.shape[1]
    # Only the default Bottleneck config is supported (stride=1, groups=1,
    # dilation=1, downsample=None => Cin == Cout).
    assert Cin == Cout, "identity residual requires inplanes == planes * 4"

    # Whole-image tile per grid step. Rough per-step VMEM estimate (double-
    # buffered bf16 x/out blocks + bf16 conv2 taps + f32 accumulators); guard
    # explicitly instead of silently overflowing the scoped VMEM budget.
    per_step_bytes = (2 * H * W * Cin * 2           # x block (2 buffers, bf16)
                      + 2 * H * W * Cout * 2        # out block (2 buffers, bf16)
                      + (H + 2) * W * (6 * Wd) * 2  # h1p + shifted taps + s_cat
                      + H * W * (Wd + Cout) * 4)    # f32 acc + conv3 out
    assert per_step_bytes < 24 * 1024 * 1024, (
        "whole-image tile exceeds VMEM budget; add row tiling "
        "(TODO(synk): halo-window row-tiled variant)")

    x = x_nhwc.astype(jnp.bfloat16)   # no-op when the caller already uses bf16

    const2 = lambda n: (0, 0)
    const3 = lambda n: (0, 0, 0)

    out = pl.pallas_call(
        bottleneck_kernel,
        out_shape=jax.ShapeDtypeStruct((N, H, W, Cout), jnp.bfloat16),
        grid=(N,),
        in_specs=[
            pl.BlockSpec((1, H, W, Cin), lambda n: (n, 0, 0, 0)),
            pl.BlockSpec(w1.shape, const2),
            pl.BlockSpec(b1.shape, const2),
            pl.BlockSpec(w2.shape, const3),
            pl.BlockSpec(b2.shape, const2),
            pl.BlockSpec(w3.shape, const2),
            pl.BlockSpec(b3.shape, const2),
        ],
        out_specs=pl.BlockSpec((1, H, W, Cout), lambda n: (n, 0, 0, 0)),
        compiler_params=pltpu.CompilerParams(
            dimension_semantics=("parallel",),
            vmem_limit_bytes=32 * 1024 * 1024,
        ),
    )(x, w1, b1, w2, b2, w3, b3)
    return out


def make_params(key, inplanes, planes, base_width=64, groups=1):
    """Deterministic synthetic params matching the PyTorch module's shapes.

    Returns (kernel_params, torch_params): kernel_params have BN scales folded
    into bf16 weights; torch_params keep OIHW f32 weights + BN affine for the
    pure-JAX reference.
    """
    width = int(planes * (base_width / 64.0)) * groups
    cout = planes * 4  # expansion
    eps = 1e-5
    ks = jax.random.split(key, 6)

    # PyTorch conv weights are OIHW.
    wt1 = jax.random.normal(ks[0], (width, inplanes, 1, 1), jnp.float32) / np.sqrt(inplanes)
    wt2 = jax.random.normal(ks[1], (width, width, 3, 3), jnp.float32) / np.sqrt(9 * width)
    wt3 = jax.random.normal(ks[2], (cout, width, 1, 1), jnp.float32) / np.sqrt(width)

    def bn_fold(k, c):
        kg, kb, km, kv = jax.random.split(k, 4)
        gamma = 1.0 + 0.1 * jax.random.normal(kg, (c,), jnp.float32)
        beta = 0.1 * jax.random.normal(kb, (c,), jnp.float32)
        mean = 0.1 * jax.random.normal(km, (c,), jnp.float32)
        var = jax.nn.softplus(jax.random.normal(kv, (c,), jnp.float32)) + 0.5
        scale = gamma / jnp.sqrt(var + eps)
        bias = beta - mean * scale
        return scale, bias

    s1, b1 = bn_fold(ks[3], width)
    s2, b2 = bn_fold(ks[4], width)
    s3, b3 = bn_fold(ks[5], cout)

    # Kernel-side layouts: BN scale folded into the weights (kernel only does
    # bias + ReLU), weights in bf16 for the MXU, biases stay f32.
    w1 = (jnp.transpose(wt1[:, :, 0, 0], (1, 0)) * s1[None, :]).astype(jnp.bfloat16)        # (Cin, width)
    # OIHW -> (ky, kx, in, out), fold scale on out, merge (kx, in) kx-major so
    # it matches the in-kernel channel concat order [x-1, x, x+1].
    w2 = (jnp.transpose(wt2, (2, 3, 1, 0)) * s2[None, None, None, :]
          ).reshape(3, 3 * width, width).astype(jnp.bfloat16)                               # (3, 3*width, width)
    w3 = (jnp.transpose(wt3[:, :, 0, 0], (1, 0)) * s3[None, :]).astype(jnp.bfloat16)        # (width, cout)

    kernel_params = (w1, b1.reshape(1, -1),
                     w2, b2.reshape(1, -1),
                     w3, b3.reshape(1, -1))
    torch_params = (wt1, wt2, wt3, s1, b1, s2, b2, s3, b3)
    return kernel_params, torch_params


def reference_forward_nhwc(x, torch_params):
    """Pure-JAX NHWC f32 reference mirroring the PyTorch forward (eval-mode BN)."""
    wt1, wt2, wt3, s1, b1, s2, b2, s3, b3 = torch_params

    def conv(x, w, pad):
        return lax.conv_general_dilated(
            x, w, window_strides=(1, 1), padding=[(pad, pad), (pad, pad)],
            dimension_numbers=('NHWC', 'OIHW', 'NHWC'))

    def bn(x, s, b):
        return x * s.reshape(1, 1, 1, -1) + b.reshape(1, 1, 1, -1)

    out = jax.nn.relu(bn(conv(x, wt1, 0), s1, b1))
    out = jax.nn.relu(bn(conv(out, wt2, 1), s2, b2))
    out = bn(conv(out, wt3, 0), s3, b3)
    return jax.nn.relu(out + x)


if __name__ == "__main__":
    # Small but lane-friendly shapes: batch=2, inplanes=128, planes=32
    # (=> width=32, out channels=128 = lane-dense), spatial 16x16.
    # downsample=None requires inplanes == planes * 4.
    N, inplanes, planes, H, W = 2, 128, 32, 16, 16

    key = jax.random.PRNGKey(0)
    kx, kp = jax.random.split(key)
    x_f32 = jax.random.normal(kx, (N, H, W, inplanes), jnp.float32)   # NHWC

    kernel_params, torch_params = make_params(kp, inplanes, planes)

    # Kernel consumes bf16 activations; reference consumes the same bf16-
    # quantized activations but computes in f32 with unfolded BN.
    x_bf16 = x_f32.astype(jnp.bfloat16)
    out = jax.block_until_ready(bottleneck_forward(x_bf16, kernel_params))
    ref = jax.block_until_ready(
        reference_forward_nhwc(x_bf16.astype(jnp.float32), torch_params))

    # bf16 weights/activations with f32 accumulation => loosened tolerance.
    np.testing.assert_allclose(np.asarray(out.astype(jnp.float32)),
                               np.asarray(ref), rtol=5e-2, atol=5e-2)
    print("KERNEL_OK")
</pallas_src>

<mosaic_0001>
module attributes {stable_mosaic.version = 11 : i64} {
  func.func @bottleneck_kernel(%arg0: i32, %arg1: memref<1x16x16x128xbf16, #tpu.memory_space<vmem>>, %arg2: memref<128x32xbf16, #tpu.memory_space<vmem>>, %arg3: memref<1x32xf32, #tpu.memory_space<vmem>>, %arg4: memref<3x96x32xbf16, #tpu.memory_space<vmem>>, %arg5: memref<1x32xf32, #tpu.memory_space<vmem>>, %arg6: memref<32x128xbf16, #tpu.memory_space<vmem>>, %arg7: memref<1x128xf32, #tpu.memory_space<vmem>>, %arg8: memref<1x16x16x128xbf16, #tpu.memory_space<vmem>>) attributes {dimension_semantics = [#tpu.dimension_semantics<parallel>], iteration_bounds = array<i64: 2>, scalar_prefetch = 0 : i64, scratch_operands = 0 : i64, tpu.core_type = #tpu.core_type<tc>, window_params = [{transform_indices = @transform_0, window_bounds = array<i64: 1, 16, 16, 128>}, {pipeline_mode = #tpu.pipeline_mode<synchronous>, transform_indices = @transform_1, window_bounds = array<i64: 128, 32>}, {pipeline_mode = #tpu.pipeline_mode<synchronous>, transform_indices = @transform_2, window_bounds = array<i64: 1, 32>}, {pipeline_mode = #tpu.pipeline_mode<synchronous>, transform_indices = @transform_3, window_bounds = array<i64: 3, 96, 32>}, {pipeline_mode = #tpu.pipeline_mode<synchronous>, transform_indices = @transform_4, window_bounds = array<i64: 1, 32>}, {pipeline_mode = #tpu.pipeline_mode<synchronous>, transform_indices = @transform_5, window_bounds = array<i64: 32, 128>}, {pipeline_mode = #tpu.pipeline_mode<synchronous>, transform_indices = @transform_6, window_bounds = array<i64: 1, 128>}, {transform_indices = @transform_7, window_bounds = array<i64: 1, 16, 16, 128>}]} {
    %c0 = arith.constant 0 : index
    %c0_0 = arith.constant 0 : index
    %c0_1 = arith.constant 0 : index
    %c0_2 = arith.constant 0 : index
    %0 = vector.load %arg1[%c0, %c0_0, %c0_1, %c0_2] : memref<1x16x16x128xbf16, #tpu.memory_space<vmem>>, vector<1x16x16x128xbf16>
    %1 = vector.shape_cast %0 : vector<1x16x16x128xbf16> to vector<16x16x128xbf16>
    %2 = vector.shape_cast %1 : vector<16x16x128xbf16> to vector<256x128xbf16>
    %c0_3 = arith.constant 0 : index
    %c0_4 = arith.constant 0 : index
    %3 = vector.load %arg2[%c0_3, %c0_4] : memref<128x32xbf16, #tpu.memory_space<vmem>>, vector<128x32xbf16>
    %cst = arith.constant dense<0.000000e+00> : vector<256x32xf32>
    %4 = tpu.matmul %2, %3, %cst {dimension_numbers = #tpu.dot_dimension_numbers<[1], [0], [0], [1], [0, 0, 1, 1], [], []>} : vector<256x128xbf16>, vector<128x32xbf16>, vector<256x32xf32> -> vector<256x32xf32>
    %c0_5 = arith.constant 0 : index
    %c0_6 = arith.constant 0 : index
    %5 = vector.load %arg3[%c0_5, %c0_6] : memref<1x32xf32, #tpu.memory_space<vmem>>, vector<1x32xf32>
    %6 = vector.broadcast %5 : vector<1x32xf32> to vector<256x32xf32>
    %7 = arith.addf %4, %6 : vector<256x32xf32>
    %cst_7 = arith.constant 0.000000e+00 : f32
    %8 = vector.broadcast %cst_7 : f32 to vector<256x32xf32>
    %9 = arith.maximumf %7, %8 : vector<256x32xf32>
    %10 = vector.shape_cast %9 : vector<256x32xf32> to vector<16x16x32xf32>
    %11 = arith.truncf %10 : vector<16x16x32xf32> to vector<16x16x32xbf16>
    %cst_8 = arith.constant 0.000000e+00 : bf16
    %12 = vector.broadcast %cst_8 : bf16 to vector<1x16x32xbf16>
    %13 = tpu.concatenate %12, %11, %12 in 0 : vector<1x16x32xbf16>, vector<16x16x32xbf16>, vector<1x16x32xbf16> -> vector<18x16x32xbf16>
    %cst_9 = arith.constant 0.000000e+00 : bf16
    %14 = vector.broadcast %cst_9 : bf16 to vector<18x1x32xbf16>
    %15 = vector.extract_strided_slice %13 {offsets = [0, 0, 0], sizes = [18, 15, 32], strides = [1, 1, 1]} : vector<18x16x32xbf16> to vector<18x15x32xbf16>
    %16 = tpu.concatenate %14, %15 in 1 : vector<18x1x32xbf16>, vector<18x15x32xbf16> -> vector<18x16x32xbf16>
    %17 = vector.extract_strided_slice %13 {offsets = [0, 1, 0], sizes = [18, 15, 32], strides = [1, 1, 1]} : vector<18x16x32xbf16> to vector<18x15x32xbf16>
    %18 = tpu.concatenate %17, %14 in 1 : vector<18x15x32xbf16>, vector<18x1x32xbf16> -> vector<18x16x32xbf16>
    %19 = tpu.concatenate %16, %13, %18 in 2 : vector<18x16x32xbf16>, vector<18x16x32xbf16>, vector<18x16x32xbf16> -> vector<18x16x96xbf16>
    %cst_10 = arith.constant 0.000000e+00 : f32
    %20 = vector.broadcast %cst_10 : f32 to vector<256x32xf32>
    %21 = vector.extract_strided_slice %19 {offsets = [0, 0, 0], sizes = [16, 16, 96], strides = [1, 1, 1]} : vector<18x16x96xbf16> to vector<16x16x96xbf16>
    %22 = vector.shape_cast %21 : vector<16x16x96xbf16> to vector<256x96xbf16>
    %c0_11 = arith.constant 0 : index
    %c0_12 = arith.constant 0 : index
    %c0_13 = arith.constant 0 : index
    %23 = vector.load %arg4[%c0_11, %c0_12, %c0_13] : memref<3x96x32xbf16, #tpu.memory_space<vmem>>, vector<1x96x32xbf16>
    %24 = vector.shape_cast %23 : vector<1x96x32xbf16> to vector<96x32xbf16>
    %cst_14 = arith.constant dense<0.000000e+00> : vector<256x32xf32>
    %25 = tpu.matmul %22, %24, %cst_14 {dimension_numbers = #tpu.dot_dimension_numbers<[1], [0], [0], [1], [0, 0, 1, 1], [], []>} : vector<256x96xbf16>, vector<96x32xbf16>, vector<256x32xf32> -> vector<256x32xf32>
    %26 = arith.addf %20, %25 : vector<256x32xf32>
    %27 = vector.extract_strided_slice %19 {offsets = [1, 0, 0], sizes = [16, 16, 96], strides = [1, 1, 1]} : vector<18x16x96xbf16> to vector<16x16x96xbf16>
    %28 = vector.shape_cast %27 : vector<16x16x96xbf16> to vector<256x96xbf16>
    %c1 = arith.constant 1 : index
    %c0_15 = arith.constant 0 : index
    %c0_16 = arith.constant 0 : index
    %29 = vector.load %arg4[%c1, %c0_15, %c0_16] : memref<3x96x32xbf16, #tpu.memory_space<vmem>>, vector<1x96x32xbf16>
    %30 = vector.shape_cast %29 : vector<1x96x32xbf16> to vector<96x32xbf16>
    %cst_17 = arith.constant dense<0.000000e+00> : vector<256x32xf32>
    %31 = tpu.matmul %28, %30, %cst_17 {dimension_numbers = #tpu.dot_dimension_numbers<[1], [0], [0], [1], [0, 0, 1, 1], [], []>} : vector<256x96xbf16>, vector<96x32xbf16>, vector<256x32xf32> -> vector<256x32xf32>
    %32 = arith.addf %26, %31 : vector<256x32xf32>
    %33 = vector.extract_strided_slice %19 {offsets = [2, 0, 0], sizes = [16, 16, 96], strides = [1, 1, 1]} : vector<18x16x96xbf16> to vector<16x16x96xbf16>
    %34 = vector.shape_cast %33 : vector<16x16x96xbf16> to vector<256x96xbf16>
    %c2 = arith.constant 2 : index
    %c0_18 = arith.constant 0 : index
    %c0_19 = arith.constant 0 : index
    %35 = vector.load %arg4[%c2, %c0_18, %c0_19] : memref<3x96x32xbf16, #tpu.memory_space<vmem>>, vector<1x96x32xbf16>
    %36 = vector.shape_cast %35 : vector<1x96x32xbf16> to vector<96x32xbf16>
    %cst_20 = arith.constant dense<0.000000e+00> : vector<256x32xf32>
    %37 = tpu.matmul %34, %36, %cst_20 {dimension_numbers = #tpu.dot_dimension_numbers<[1], [0], [0], [1], [0, 0, 1, 1], [], []>} : vector<256x96xbf16>, vector<96x32xbf16>, vector<256x32xf32> -> vector<256x32xf32>
    %38 = arith.addf %32, %37 : vector<256x32xf32>
    %c0_21 = arith.constant 0 : index
    %c0_22 = arith.constant 0 : index
    %39 = vector.load %arg5[%c0_21, %c0_22] : memref<1x32xf32, #tpu.memory_space<vmem>>, vector<1x32xf32>
    %40 = vector.broadcast %39 : vector<1x32xf32> to vector<256x32xf32>
    %41 = arith.addf %38, %40 : vector<256x32xf32>
    %cst_23 = arith.constant 0.000000e+00 : f32
    %42 = vector.broadcast %cst_23 : f32 to vector<256x32xf32>
    %43 = arith.maximumf %41, %42 : vector<256x32xf32>
    %44 = arith.truncf %43 : vector<256x32xf32> to vector<256x32xbf16>
    %c0_24 = arith.constant 0 : index
    %c0_25 = arith.constant 0 : index
    %45 = vector.load %arg6[%c0_24, %c0_25] : memref<32x128xbf16, #tpu.memory_space<vmem>>, vector<32x128xbf16>
    %cst_26 = arith.constant dense<0.000000e+00> : vector<256x128xf32>
    %46 = tpu.matmul %44, %45, %cst_26 {dimension_numbers = #tpu.dot_dimension_numbers<[1], [0], [0], [1], [0, 0, 1, 1], [], []>} : vector<256x32xbf16>, vector<32x128xbf16>, vector<256x128xf32> -> vector<256x128xf32>
    %c0_27 = arith.constant 0 : index
    %c0_28 = arith.constant 0 : index
    %47 = vector.load %arg7[%c0_27, %c0_28] : memref<1x128xf32, #tpu.memory_space<vmem>>, vector<1x128xf32>
    %48 = vector.broadcast %47 : vector<1x128xf32> to vector<256x128xf32>
    %49 = arith.addf %46, %48 : vector<256x128xf32>
    %50 = arith.extf %2 : vector<256x128xbf16> to vector<256x128xf32>
    %51 = arith.addf %49, %50 : vector<256x128xf32>
    %cst_29 = arith.constant 0.000000e+00 : f32
    %52 = vector.broadcast %cst_29 : f32 to vector<256x128xf32>
    %53 = arith.maximumf %51, %52 : vector<256x128xf32>
    %54 = vector.shape_cast %53 : vector<256x128xf32> to vector<16x16x128xf32>
    %55 = arith.truncf %54 : vector<16x16x128xf32> to vector<16x16x128xbf16>
    %c0_30 = arith.constant 0 : index
    %c0_31 = arith.constant 0 : index
    %c0_32 = arith.constant 0 : index
    %c0_33 = arith.constant 0 : index
    %56 = vector.load %arg8[%c0_30, %c0_31, %c0_32, %c0_33] : memref<1x16x16x128xbf16, #tpu.memory_space<vmem>>, vector<1x16x16x128xbf16>
    %57 = vector.shape_cast %56 : vector<1x16x16x128xbf16> to vector<16x16x128xbf16>
    %58 = vector.shape_cast %55 : vector<16x16x128xbf16> to vector<1x16x16x128xbf16>
    tpu.vector_store %arg8[%c0_30, %c0_31, %c0_32, %c0_33], %58 {strides = array<i32>} : memref<1x16x16x128xbf16, #tpu.memory_space<vmem>>, vector<1x16x16x128xbf16>,
    return
  }
  func.func @transform_0(%arg0: i32) -> (i32, i32, i32, i32) {
    %c0_i32 = arith.constant 0 : i32
    %c0_i32_0 = arith.constant 0 : i32
    %c0_i32_1 = arith.constant 0 : i32
    %c0_i32_2 = arith.constant 0 : i32
    return %arg0, %c0_i32, %c0_i32_0, %c0_i32_1 : i32, i32, i32, i32
  }
  func.func @transform_1(%arg0: i32) -> (i32, i32) {
    %c0_i32 = arith.constant 0 : i32
    %c0_i32_0 = arith.constant 0 : i32
    %c0_i32_1 = arith.constant 0 : i32
    return %c0_i32, %c0_i32_0 : i32, i32
  }
  func.func @transform_2(%arg0: i32) -> (i32, i32) {
    %c0_i32 = arith.constant 0 : i32
    %c0_i32_0 = arith.constant 0 : i32
    %c0_i32_1 = arith.constant 0 : i32
    return %c0_i32, %c0_i32_0 : i32, i32
  }
  func.func @transform_3(%arg0: i32) -> (i32, i32, i32) {
    %c0_i32 = arith.constant 0 : i32
    %c0_i32_0 = arith.constant 0 : i32
    %c0_i32_1 = arith.constant 0 : i32
    %c0_i32_2 = arith.constant 0 : i32
    return %c0_i32, %c0_i32_0, %c0_i32_1 : i32, i32, i32
  }
  func.func @transform_4(%arg0: i32) -> (i32, i32) {
    %c0_i32 = arith.constant 0 : i32
    %c0_i32_0 = arith.constant 0 : i32
    %c0_i32_1 = arith.constant 0 : i32
    return %c0_i32, %c0_i32_0 : i32, i32
  }
  func.func @transform_5(%arg0: i32) -> (i32, i32) {
    %c0_i32 = arith.constant 0 : i32
    %c0_i32_0 = arith.constant 0 : i32
    %c0_i32_1 = arith.constant 0 : i32
    return %c0_i32, %c0_i32_0 : i32, i32
  }
  func.func @transform_6(%arg0: i32) -> (i32, i32) {
    %c0_i32 = arith.constant 0 : i32
    %c0_i32_0 = arith.constant 0 : i32
    %c0_i32_1 = arith.constant 0 : i32
    return %c0_i32, %c0_i32_0 : i32, i32
  }
  func.func @transform_7(%arg0: i32) -> (i32, i32, i32, i32) {
    %c0_i32 = arith.constant 0 : i32
    %c0_i32_0 = arith.constant 0 : i32
    %c0_i32_1 = arith.constant 0 : i32
    %c0_i32_2 = arith.constant 0 : i32
    return %arg0, %c0_i32, %c0_i32_0, %c0_i32_1 : i32, i32, i32, i32
  }
}

</mosaic_0001>

<bundles_post_ra>
// kernel: tpu_custom_call.1
= control target key start
LH: loop header
LB: loop body
LE: loop exit
PB: predicated region body
PF: predicated region fallthrough
CT: control target
= control target key end

     0   :  { %12 = vsyncpa [#allocation3], 0  ;;  %s3572_s0 = inlined_call_operand.hbm [shape: bf16[2,16,16,128], index: 0, kind: input, shape index: {}]   ;;  %s3573_s1 = inlined_call_operand.vmem [shape: bf16[128,32], index: 1, kind: input, shape index: {}]   ;;  %s3574_s2 = inlined_call_operand.vmem [shape: f32[1,32], index: 2, kind: input, shape index: {}]   ;;  %s3575_s3 = inlined_call_operand.vmem [shape: bf16[3,96,32], index: 3, kind: input, shape index: {}]   ;;  %s3576_s4 = inlined_call_operand.vmem [shape: f32[1,32], index: 4, kind: input, shape index: {}]   ;;  %s3577_s5 = inlined_call_operand.vmem [shape: bf16[32,128], index: 5, kind: input, shape index: {}]   ;;  %s3578_s6 = inlined_call_operand.vmem [shape: f32[1,128], index: 6, kind: input, shape index: {}]   ;;  %s3579_s7 = inlined_call_operand.hbm [shape: bf16[2,16,16,128], index: 7, kind: output, shape index: {}]  }
   0x1   :  { %14 = vsyncpa [#allocation3 + $0x1], 0 }
   0x2   :  { %15 = vsyncpa [#allocation4], 0 }
   0x3   :  { %17 = vsyncpa [#allocation4 + $0x1], 0  ;;  %s2735_s24 = smov 0   ;;  %s2737_s25 = smov 0  }
   0x4   :  { %s2739_s26 = smov 0   ;;  %s2741_s27 = smov 0  }
   0x5 LB: > { %s2756_s28 = sadd.s32 4294967295, %s2687_s27   ;;  %s2099_s29 = sadd.s32 4294967294, %s2687_s27   ;;  %s2687_s27 = sphi %s2741_s27, %s3595_s27   ;;  %s2683_s26 = sphi %s2739_s26, %s3594_s26   ;;  %s2679_s25 = sphi %s2737_s25, %s3593_s25   ;;  %s2675_s24 = sphi %s2735_s24, %s3592_s24  }
   0x6   : > { %s2760_s30 = sadd.s32 1, %s2687_s27   ;;  %s30_s8 = sadd.s32 1, %s2683_s26 }
   0x7   : > { %s27_s9 = ssub.s32 %s2687_s27, %s2760_s30  ;;  %p37_p0 = scmp.ne.s32.totalorder %s2683_s26, %s2679_s25 }
   0x8   : > { %p28_p1 = scmp.eq.s32.totalorder %s27_s9, 0  ;;  %p38_p2 = scmp.eq.s32.totalorder %s2687_s27, 0 }
   0x9   : > { %p43_p3 = scmp.ne.s32.totalorder %s2679_s25, %s2675_s24  ;;  %p44_p4 = scmp.eq.s32.totalorder %s2756_s28, 0 }
   0xa   : > { %s2772_s10 = scalar_select %p28_p1, %s2683_s26, %s30_s8  }
   0xb   : > { %p2774_p5 = por %p38_p2, %p37_p0  ;;  %p2778_p6 = por %p44_p4, %p43_p3 }
   0xc   : > { %3580 = sst [smem:[#allocation8_spill]] %s2772_s10  ;;  %p193_p7 = scmp.eq.s32.totalorder %s2756_s28, 1 }
   0xd   : > { %p199_p8 = scmp.eq.s32.totalorder %s2099_s29, 1  ;;  %p2548_p10 = scmp.lt.s32.totalorder %s2687_s27, 2 }
   0xe   : > { %p2785_p11 = por %p193_p7, %p37_p0  ;;  %s237_s15 = sand.u32 1, %s2683_s26  }
   0xf   : > { %p2789_p12 = por %p199_p8, %p43_p3  ;;  %s2377_s16 = sshll.u32 %s2687_s27, 7 }
  0x10   : > { %s2102_s17 = sshll.u32 %s237_s15, 7  ;;  %s246_s20 = scalar_lea.hbm %s3572_s0, %s2377_s16 }
  0x11   : > { %s247_s21 = sshll.u32 %s246_s20, 4  ;;  %s241_s22 = scalar_lea.vmem [#allocation2], %s2102_s17  ;;  %s248_s21 = int_to_ptr.hbm [resolvable:$true] %s247_s21 }
  0x12   : > { %s249_s23 = sshll.u32 %s241_s22, 4  ;;  %p2800_p13 = pnand %p2548_p10, %p2774_p5  ;;  %s250_s23 = int_to_ptr.vmem [resolvable:$true] %s249_s23 }
  0x13   : > { %p2105_p0 = scmp.ge.s32.totalorder %s2687_s27, 1  ;;  %p257_p1 = scmp.lt.s32.totalorder %s2687_s27, 3 }
  0x14   : > { %s238_s8 = scalar_lea.sflag [#allocation3], %s237_s15  ;;  %s2591_s9 = sshra.s32 %s248_s21, 4  ;;  %s2592_s9 = int_to_ptr.hbm [resolvable:$true] %s2591_s9 }
  0x15   : > { %s2593_s10 = scalar_lea.hbm %s2592_s9, 128  ;;  %p2595_p3 = pneg %p2800_p13 }
  0x16   : > { %p2594_p2 = scmp.ne.s32.totalorder %s2592_s9, %s2593_s10  ;;  %s2598_s11 = scalar_lea.hbm %s3572_s0, 256 }
  0x17   : > { %p2599_p5 = scmp.lt.s32.totalorder %s2592_s9, %s3572_s0  ;;  %p2600_p8 = scmp.lt.s32.totalorder %s2598_s11, %s2593_s10 }
  0x18   : > { %p2596_p4 = pnand %p2595_p3, %p2594_p2 }
  0x19   : > { %p2601_p10 = por %p2600_p8, %p2599_p5 }
  0x1a   : > { %p2597_p7 = pneg %p2596_p4 }
  0x1c   : > { %p2602_p9 = pnand %p2601_p10, %p2597_p7 }
  0x1e   : > { %2605 = shalt.err (!%p2602_p9)
}
  0x1f   : > { %s2689_s15 = smov 64   ;;  %s2690_s20 = smov 4  }
  0x20   : > { %2543 = dma.hbm_to_vmem [thread:$0]  (!%p2800_p13), %s248_s21, 2048, %s250_s23, %s238_s8, %s2689_s15, %s2689_s15, %s2690_s20  }
  0x21   : > { %p258_p2 = pnand %p2105_p0, %p257_p1 }
  0x22   : > { %s2821_s22 = sand.u32 (!%p258_p2), 1, %s2679_s25  }
  0x23   : > { %261 = sbr.rel (%p258_p2) target bundleno = 1131 (0x46b), region = 48  ;;  %s2106_s10 = sshll.u32 (!%p258_p2), %s2821_s22, 7 }
  0x24   : > { %s264_s9 = scalar_lea.sflag (!%p258_p2), [#allocation3], %s2821_s22  ;;  %s2827_s16 = scalar_lea.vmem (!%p258_p2), [#allocation2], %s2106_s10 }
  0x28   : > { %2666 = dma.done.wait (%p2778_p6), %s264_s9, 2048  }
  0x29   : > { %2668 = vsyncadd (%p2778_p6), %s264_s9, 4294965248  ;;  %v2401_v0 = vld [vmem:[%s3573_s1 + $0x38] sm:$0xff]  ;;  %v2400_v1 = vld [vmem:[%s3573_s1 + $0x30] sm:$0xff]  ;;  %s2691_s20 = smov 32   ;;  %vm936_vm0 = vcmask 1047552   ;;  %s2692_s9 = smov 64  }
  0x2a   : > { %496 = vmatpush.bf16.msra.mxu0 %v2401_v0  ;;  %v2399_v2 = vld [vmem:[%s3573_s1 + $0x28] sm:$0xff]  ;;  %v2398_v3 = vld [vmem:[%s3573_s1 + $0x20] sm:$0xff]  ;;  %v2397_v4 = vld [vmem:[%s3573_s1 + $0x18] sm:$0xff]  ;;  %vm937_vm1 = vsmask.f32 7424  ;;  %vm865_vm3 = vcmask 1040384  }
  0x2b   : > { %v2396_v5 = vld [vmem:[%s3573_s1 + $0x10] sm:$0xff]  ;;  %v2395_v6 = vld [vmem:[%s3573_s1 + $0x8] sm:$0xff]  ;;  %v2394_v7 = vld [vmem:[%s3573_s1] sm:$0xff]  ;;  %vm866_vm4 = vsmask.f32 256  ;;  %vm1042_vm5 = vcmask 261120  }
  0x2c   : > { %v2378_v8 = vld [vmem:[%s2827_s16] sm:$0xff]  ;;  %v2379_v9 = vld [vmem:[%s2827_s16 + $0x8] sm:$0xff]  ;;  %v2380_v10 = vld [vmem:[%s2827_s16 + $0x10] sm:$0xff]  ;;  %vm1094_vm7 = vcmask 523264   ;;  %vm1190_vm8 = vcmask 785408   ;;  %s3442_s18 = scalar_lea.vmem [#allocation5], %s2106_s10 }
  0x2d   : > { %v2381_v11 = vld [vmem:[%s2827_s16 + $0x18] sm:$0xff]  ;;  %v2382_v12 = vld [vmem:[%s2827_s16 + $0x20] sm:$0xff]  ;;  %v2383_v13 = vld [vmem:[%s2827_s16 + $0x28] sm:$0xff]  ;;  %s2422_s10 = sshll.u32 %s2756_s28, 7  ;;  %s2023_s23 = sshll.u32 %s3442_s18, 4  ;;  %s2024_s23 = int_to_ptr.vmem [resolvable:$true] %s2023_s23 }
  0x2e   : > { %497 = vmatpush.bf16.msra.mxu0 %v2400_v1  ;;  %v2384_v14 = vld [vmem:[%s2827_s16 + $0x30] sm:$0xff]  ;;  %v2385_v15 = vld [vmem:[%s2827_s16 + $0x38] sm:$0xff]  ;;  %v2868_v16 = vld [vmem:[%s3574_s2] ss:$0 sm:$0xff]  ;;  %s2022_s21 = scalar_lea.hbm %s3579_s7, %s2422_s10  ;;  %s2011_s28 = scalar_lea.sflag [#allocation4], %s2821_s22 }
  0x2f   : > { %v2386_v17 = vld [vmem:[%s2827_s16 + $0x40] sm:$0xff]  ;;  %v2387_v28 = vld [vmem:[%s2827_s16 + $0x48] sm:$0xff]  ;;  %v2388_v44 = vld [vmem:[%s2827_s16 + $0x50] sm:$0xff]  ;;  %s2025_s29 = sshll.u32 %s2022_s21, 4  ;;  %s2641_s11 = scalar_lea.hbm %s3579_s7, 256  ;;  %s2026_s29 = int_to_ptr.hbm [resolvable:$true] %s2025_s29 }
  0x30   : > { %v2389_v60 = vld [vmem:[%s2827_s16 + $0x58] sm:$0xff]  ;;  %vm2998_vm2 = vmand %vm936_vm0, %vm937_vm1 }
  0x31   : > { %vm3102_vm6 = vmand %vm865_vm3, %vm866_vm4 }
  0x32   : > { %498 = vmatpush.bf16.msra.mxu0 %v2399_v2 }
  0x36   : > { %499 = vmatpush.bf16.msra.mxu0 %v2398_v3 }
  0x3a   : > { %500 = vmatpush.bf16.msra.mxu0 %v2397_v4 }
  0x3e   : > { %501 = vmatpush.bf16.msra.mxu0 %v2396_v5 }
  0x42   : > { %502 = vmatpush.bf16.msra.mxu0 %v2395_v6 }
  0x46   : > { %503 = vmatpush.bf16.msra.mxu0 %v2394_v7 }
  0x49   : > { %504 = vmatmul.bf16.vlgmr.msra.gmra.mxu0 %v2378_v8 }
  0x59   : > { %509 = vmatmul.bf16.gmra.mxu0 %v2379_v9 }
  0x69   : > { %514 = vmatmul.bf16.gmra.mxu0 %v2380_v10 }
  0x79   : > { %519 = vmatmul.bf16.gmra.mxu0 %v2381_v11 }
  0x89   : > { %524 = vmatmul.bf16.gmra.mxu0 %v2382_v12  ;;  %v2390_v12 = vld [vmem:[%s2827_s16 + $0x60] sm:$0xff] }
  0x99   : > { %529 = vmatmul.bf16.gmra.mxu0 %v2383_v13 }
  0xa9   : > { %534 = vmatmul.bf16.gmra.mxu0 %v2384_v14 }
  0xb9   : > { %539 = vmatmul.bf16.gmra.mxu0 %v2385_v15 }
  0xc6   : > { %v505_v18 = vpop.f32.mrf.mxu0 }
  0xc7   : > { %v506_v19 = vadd.f32 %v2868_v16, %v505_v18 }
  0xc9   : > { %544 = vmatmul.bf16.gmra.mxu0 %v2386_v17  ;;  %v585_v20 = vmax.f32 %v506_v19, 0.0 }
  0xcb   : > { %v617_v23 = vpack.c.bf16 %v585_v20, %v585_v20 }
  0xcd   : > { %v681_v26 = vunpack.c.l.b16 %v617_v23 }
  0xce   : > { %v507_v21 = vpop.f32.mrf.mxu0 }
  0xcf   : > { %v508_v22 = vadd.f32 %v2868_v16, %v507_v21 }
  0xd1   : > { %v586_v24 = vmax.f32 %v508_v22, 0.0 }
  0xd3   : > { %v618_v25 = vpack.c.bf16 %v586_v24, %v586_v24 }
  0xd5   : > { %v682_v27 = vunpack.c.l.b16 %v618_v25 }
  0xd6   : > { %v510_v29 = vpop.f32.mrf.mxu0 }
  0xd7   : > { %v2874_v30 = vpack.c.b16 %v682_v27, %v681_v26  ;;  %v511_v31 = vadd.f32 %v2868_v16, %v510_v29  ;;  %v2391_v29 = vld [vmem:[%s2827_s16 + $0x68] sm:$0xff] }
  0xd9   : > { %549 = vmatmul.bf16.gmra.mxu0 %v2387_v28  ;;  %v737_v32 = vshrl.u32 %v2874_v30, 16  ;;  %v740_v33 = vshll.u32 %v2874_v30, 16  ;;  %v587_v35 = vmax.f32 %v511_v31, 0.0 }
  0xdb   : > { %v739_v34 = vrot.slane %v737_v32, 7  ;;  %v619_v39 = vpack.c.bf16 %v587_v35, %v587_v35 }
  0xdd   : > { %v2883_v36 = vor.u32 %v740_v33, %v739_v34  ;;  %v683_v42 = vunpack.c.l.b16 %v619_v39 }
  0xde   : > { %v512_v37 = vpop.f32.mrf.mxu0 }
  0xdf   : > { %v513_v38 = vadd.f32 %v2868_v16, %v512_v37 }
  0xe1   : > { %v588_v40 = vmax.f32 %v513_v38, 0.0 }
  0xe3   : > { %v620_v41 = vpack.c.bf16 %v588_v40, %v588_v40 }
  0xe5   : > { %v684_v43 = vunpack.c.l.b16 %v620_v41 }
  0xe6   : > { %v515_v45 = vpop.f32.mrf.mxu0 }
  0xe7   : > { %v2887_v46 = vpack.c.b16 %v684_v43, %v683_v42  ;;  %v516_v47 = vadd.f32 %v2868_v16, %v515_v45 }
  0xe9   : > { %554 = vmatmul.bf16.gmra.mxu0 %v2388_v44  ;;  %v744_v48 = vshrl.u32 %v2887_v46, 16  ;;  %v747_v49 = vshll.u32 %v2887_v46, 16  ;;  %v589_v51 = vmax.f32 %v516_v47, 0.0 }
  0xeb   : > { %v746_v50 = vrot.slane %v744_v48, 7  ;;  %v621_v55 = vpack.c.bf16 %v589_v51, %v589_v51 }
  0xed   : > { %v2896_v52 = vor.u32 %v747_v49, %v746_v50  ;;  %v685_v58 = vunpack.c.l.b16 %v621_v55 }
  0xee   : > { %v517_v53 = vpop.f32.mrf.mxu0 }
  0xef   : > { %v518_v54 = vadd.f32 %v2868_v16, %v517_v53  ;;  %v2392_v53 = vld [vmem:[%s2827_s16 + $0x70] sm:$0xff] }
  0xf1   : > { %v590_v56 = vmax.f32 %v518_v54, 0.0 }
  0xf3   : > { %v622_v57 = vpack.c.bf16 %v590_v56, %v590_v56 }
  0xf5   : > { %v686_v59 = vunpack.c.l.b16 %v622_v57 }
  0xf6   : > { %v520_v61 = vpop.f32.mrf.mxu0 }
  0xf7   : > { %v2900_v62 = vpack.c.b16 %v686_v59, %v685_v58  ;;  %v521_v63 = vadd.f32 %v2868_v16, %v520_v61 }
  0xf9   : > { %559 = vmatmul.bf16.gmra.mxu0 %v2389_v60  ;;  %v751_v0 = vshrl.u32 %v2900_v62, 16  ;;  %v754_v2 = vshll.u32 %v2900_v62, 16  ;;  %v591_v3 = vmax.f32 %v521_v63, 0.0 }
  0xfb   : > { %v753_v1 = vrot.slane %v751_v0, 7  ;;  %v623_v7 = vpack.c.bf16 %v591_v3, %v591_v3 }
  0xfd   : > { %v2909_v4 = vor.u32 %v754_v2, %v753_v1  ;;  %v687_v10 = vunpack.c.l.b16 %v623_v7 }
  0xfe   : > { %v522_v5 = vpop.f32.mrf.mxu0 }
  0xff   : > { %v523_v6 = vadd.f32 %v2868_v16, %v522_v5 }
 0x101   : > { %v592_v8 = vmax.f32 %v523_v6, 0.0 }
 0x103   : > { %v624_v9 = vpack.c.bf16 %v592_v8, %v592_v8 }
 0x105   : > { %v688_v11 = vunpack.c.l.b16 %v624_v9  ;;  %v2393_v9 = vld [vmem:[%s2827_s16 + $0x78] sm:$0xff] }
 0x106   : > { %v525_v13 = vpop.f32.mrf.mxu0 }
 0x107   : > { %v2913_v14 = vpack.c.b16 %v688_v11, %v687_v10  ;;  %v526_v15 = vadd.f32 %v2868_v16, %v525_v13 }
 0x109   : > { %564 = vmatmul.bf16.gmra.mxu0 %v2390_v12  ;;  %v758_v17 = vshrl.u32 %v2913_v14, 16  ;;  %v761_v19 = vshll.u32 %v2913_v14, 16  ;;  %v593_v20 = vmax.f32 %v526_v15, 0.0 }
 0x10b   : > { %v760_v18 = vrot.slane %v758_v17, 7  ;;  %v625_v24 = vpack.c.bf16 %v593_v20, %v593_v20 }
 0x10d   : > { %v2922_v21 = vor.u32 %v761_v19, %v760_v18  ;;  %v689_v27 = vunpack.c.l.b16 %v625_v24 }
 0x10e   : > { %v527_v22 = vpop.f32.mrf.mxu0 }
 0x10f   : > { %v528_v23 = vadd.f32 %v2868_v16, %v527_v22  ;;  %v2413_v22 = vld [vmem:[%s3575_s3 + $0x58] sm:$0xff] }
 0x110   : > { %1225 = vmatpush.bf16.msrb.mxu0 %v2413_v22  ;;  %2519 = vmatpush.bf16.msra.mxu2 %v2413_v22 }
 0x111   : > { %v594_v25 = vmax.f32 %v528_v23, 0.0  ;;  %2520 = vmatpush.bf16.msra.mxu3 %v2413_v22  ;;  %2518 = vmatpush.bf16.msra.mxu1 %v2413_v22 }
 0x113   : > { %v626_v26 = vpack.c.bf16 %v594_v25, %v594_v25 }
 0x115   : > { %v690_v28 = vunpack.c.l.b16 %v626_v26 }
 0x116   : > { %v530_v31 = vpop.f32.mrf.mxu0 }
 0x117   : > { %v2926_v34 = vpack.c.b16 %v690_v28, %v689_v27  ;;  %v531_v35 = vadd.f32 %v2868_v16, %v530_v31 }
 0x119   : > { %569 = vmatmul.bf16.gmra.mxu0 %v2391_v29  ;;  %v765_v37 = vshrl.u32 %v2926_v34, 16  ;;  %v768_v39 = vshll.u32 %v2926_v34, 16  ;;  %v595_v40 = vmax.f32 %v531_v35, 0.0 }
 0x11b   : > { %v767_v38 = vrot.slane %v765_v37, 7  ;;  %v627_v44 = vpack.c.bf16 %v595_v40, %v595_v40 }
 0x11d   : > { %v2935_v41 = vor.u32 %v768_v39, %v767_v38  ;;  %v691_v50 = vunpack.c.l.b16 %v627_v44 }
 0x11e   : > { %v532_v42 = vpop.f32.mrf.mxu0 }
 0x11f   : > { %v533_v43 = vadd.f32 %v2868_v16, %v532_v42 }
 0x121   : > { %v596_v45 = vmax.f32 %v533_v43, 0.0 }
 0x123   : > { %v628_v47 = vpack.c.bf16 %v596_v45, %v596_v45 }
 0x125   : > { %v692_v51 = vunpack.c.l.b16 %v628_v47 }
 0x126   : > { %v535_v54 = vpop.f32.mrf.mxu0 }
 0x127   : > { %v2939_v55 = vpack.c.b16 %v692_v51, %v691_v50  ;;  %v536_v56 = vadd.f32 %v2868_v16, %v535_v54 }
 0x129   : > { %574 = vmatmul.bf16.gmra.mxu0 %v2392_v53  ;;  %v772_v57 = vshrl.u32 %v2939_v55, 16  ;;  %v775_v59 = vshll.u32 %v2939_v55, 16  ;;  %v597_v60 = vmax.f32 %v536_v56, 0.0 }
 0x12b   : > { %v774_v58 = vrot.slane %v772_v57, 7  ;;  %v629_v3 = vpack.c.bf16 %v597_v60, %v597_v60 }
 0x12d   : > { %v2948_v61 = vor.u32 %v775_v59, %v774_v58  ;;  %v693_v7 = vunpack.c.l.b16 %v629_v3 }
 0x12e   : > { %v537_v63 = vpop.f32.mrf.mxu0 }
 0x12f   : > { %v538_v1 = vadd.f32 %v2868_v16, %v537_v63 }
 0x131   : > { %v598_v5 = vmax.f32 %v538_v1, 0.0 }
 0x133   : > { %v630_v6 = vpack.c.bf16 %v598_v5, %v598_v5 }
 0x135   : > { %v694_v8 = vunpack.c.l.b16 %v630_v6 }
 0x136   : > { %v540_v10 = vpop.f32.mrf.mxu0 }
 0x137   : > { %v2952_v11 = vpack.c.b16 %v694_v8, %v693_v7  ;;  %v541_v12 = vadd.f32 %v2868_v16, %v540_v10 }
 0x139   : > { %579 = vmatmul.bf16.gmra.mxu0 %v2393_v9  ;;  %v779_v13 = vshrl.u32 %v2952_v11, 16  ;;  %v782_v18 = vshll.u32 %v2952_v11, 16  ;;  %v599_v20 = vmax.f32 %v541_v12, 0.0 }
 0x13b   : > { %v781_v15 = vrot.slane %v779_v13, 7  ;;  %v631_v26 = vpack.c.bf16 %v599_v20, %v599_v20 }
 0x13d   : > { %v2964_v23 = vor.u32 %v782_v18, %v781_v15  ;;  %v695_v29 = vunpack.c.l.b16 %v631_v26  ;;  %v2412_v26 = vld [vmem:[%s3575_s3 + $0x50] sm:$0xff] }
 0x13e   : > { %v542_v24 = vpop.f32.mrf.mxu0  ;;  %1226 = vmatpush.bf16.msrb.mxu0 %v2412_v26  ;;  %2522 = vmatpush.bf16.msra.mxu2 %v2412_v26 }
 0x13f   : > { %v543_v25 = vadd.f32 %v2868_v16, %v542_v24  ;;  %2523 = vmatpush.bf16.msra.mxu3 %v2412_v26  ;;  %2521 = vmatpush.bf16.msra.mxu1 %v2412_v26 }
 0x141   : > { %v600_v27 = vmax.f32 %v543_v25, 0.0 }
 0x143   : > { %v632_v28 = vpack.c.bf16 %v600_v27, %v600_v27 }
 0x145   : > { %v696_v31 = vunpack.c.l.b16 %v632_v28 }
 0x146   : > { %v545_v35 = vpop.f32.mrf.mxu0 }
 0x147   : > { %v2967_v38 = vpack.c.b16 %v696_v31, %v695_v29  ;;  %v546_v40 = vadd.f32 %v2868_v16, %v545_v35 }
 0x149   : > { %v786_v42 = vshrl.u32 %v2967_v38, 16  ;;  %v789_v44 = vshll.u32 %v2967_v38, 16  ;;  %v601_v45 = vmax.f32 %v546_v40, 0.0 }
 0x14b   : > { %v788_v43 = vrot.slane %v786_v42, 7  ;;  %v633_v53 = vpack.c.bf16 %v601_v45, %v601_v45 }
 0x14d   : > { %v2976_v47 = vor.u32 %v789_v44, %v788_v43  ;;  %v697_v58 = vunpack.c.l.b16 %v633_v53 }
 0x14e   : > { %v547_v50 = vpop.f32.mrf.mxu0 }
 0x14f   : > { %v548_v51 = vadd.f32 %v2868_v16, %v547_v50 }
 0x151   : > { %v602_v54 = vmax.f32 %v548_v51, 0.0 }
 0x153   : > { %v634_v56 = vpack.c.bf16 %v602_v54, %v602_v54 }
 0x155   : > { %v698_v60 = vunpack.c.l.b16 %v634_v56 }
 0x156   : > { %v550_v63 = vpop.f32.mrf.mxu0 }
 0x157   : > { %v2979_v1 = vpack.c.b16 %v698_v60, %v697_v58  ;;  %v551_v3 = vadd.f32 %v2868_v16, %v550_v63 }
 0x159   : > { %v793_v5 = vshrl.u32 %v2979_v1, 16  ;;  %v796_v7 = vshll.u32 %v2979_v1, 16  ;;  %v603_v8 = vmax.f32 %v551_v3, 0.0 }
 0x15b   : > { %v795_v6 = vrot.slane %v793_v5, 7  ;;  %v635_v15 = vpack.c.bf16 %v603_v8, %v603_v8 }
 0x15d   : > { %v2988_v9 = vor.u32 %v796_v7, %v795_v6  ;;  %v699_v24 = vunpack.c.l.b16 %v635_v15 }
 0x15e   : > { %v552_v10 = vpop.f32.mrf.mxu0 }
 0x15f   : > { %v553_v12 = vadd.f32 %v2868_v16, %v552_v10 }
 0x161   : > { %v604_v20 = vmax.f32 %v553_v12, 0.0 }
 0x163   : > { %v636_v22 = vpack.c.bf16 %v604_v20, %v604_v20 }
 0x165   : > { %v700_v25 = vunpack.c.l.b16 %v636_v22 }
 0x166   : > { %v555_v27 = vpop.f32.mrf.mxu0 }
 0x167   : > { %v722_v28 = vpack.c.b16 %v700_v25, %v699_v24  ;;  %v556_v29 = vadd.f32 %v2868_v16, %v555_v27 }
 0x169   : > { %977 = vrot.lane.b32.xlu0 %v722_v28, %s2691_s20  ;;  %v800_v31 = vshrl.u32 %v722_v28, 16  ;;  %v803_v35 = vshll.u32 %v722_v28, 16  ;;  %v605_v45 = vmax.f32 %v556_v29, 0.0 }
 0x16b   : > { %v905_v40 = vrot.slane %v803_v35, 1  ;;  %v802_v43 = vrot.slane %v800_v31, 7  ;;  %v637_v60 = vpack.c.bf16 %v605_v45, %v605_v45 }
 0x16d   : > { %v906_v50 = vor.u32 %v905_v40, %v800_v31  ;;  %v2996_v51 = vor.u32 %v803_v35, %v802_v43  ;;  %v701_v6 = vunpack.c.l.b16 %v637_v60 }
 0x16e   : > { %v557_v53 = vpop.f32.mrf.mxu0 }
 0x16f   : > { %v558_v56 = vadd.f32 %v2868_v16, %v557_v53  ;;  %v949_v58 = vsel %vm2998_vm2, %v906_v50, 0 }
 0x171   : > { %v606_v63 = vmax.f32 %v558_v56, 0.0  ;;  %1028 = vrot.lane.b32.xlu0 %v949_v58, %s2692_s9 }
 0x173   : > { %v638_v3 = vpack.c.bf16 %v606_v63, %v606_v63 }
 0x175   : > { %v702_v8 = vunpack.c.l.b16 %v638_v3 }
 0x176   : > { %v560_v10 = vpop.f32.mrf.mxu0 }
 0x177   : > { %v723_v12 = vpack.c.b16 %v702_v8, %v701_v6  ;;  %v561_v15 = vadd.f32 %v2868_v16, %v560_v10 }
 0x179   : > { %979 = vrot.lane.b32.xlu1 %v723_v12, %s2691_s20  ;;  %v807_v20 = vshrl.u32 %v723_v12, 16  ;;  %v810_v22 = vshll.u32 %v723_v12, 16  ;;  %v607_v26 = vmax.f32 %v561_v15, 0.0 }
 0x17b   : > { %v907_v24 = vrot.slane %v810_v22, 1  ;;  %v809_v25 = vrot.slane %v807_v20, 7  ;;  %v639_v40 = vpack.c.bf16 %v607_v26, %v607_v26 }
 0x17d   : > { %v908_v27 = vor.u32 %v907_v24, %v807_v20  ;;  %v3008_v28 = vor.u32 %v810_v22, %v809_v25  ;;  %v703_v50 = vunpack.c.l.b16 %v639_v40 }
 0x17e   : > { %v562_v29 = vpop.f32.mrf.mxu0 }
 0x17f   : > { %v563_v31 = vadd.f32 %v2868_v16, %v562_v29  ;;  %v950_v35 = vsel %vm2998_vm2, %v908_v27, 0 }
 0x181   : > { %v608_v43 = vmax.f32 %v563_v31, 0.0  ;;  %1030 = vrot.lane.b32.xlu1 %v950_v35, %s2692_s9  ;;  %v2411_v35 = vld [vmem:[%s3575_s3 + $0x48] sm:$0xff] }
 0x182   : > { %1227 = vmatpush.bf16.msrb.mxu0 %v2411_v35  ;;  %2525 = vmatpush.bf16.msra.mxu2 %v2411_v35 }
 0x183   : > { %v640_v45 = vpack.c.bf16 %v608_v43, %v608_v43  ;;  %2526 = vmatpush.bf16.msra.mxu3 %v2411_v35  ;;  %2524 = vmatpush.bf16.msra.mxu1 %v2411_v35 }
 0x185   : > { %v704_v53 = vunpack.c.l.b16 %v640_v45 }
 0x186   : > { %v565_v56 = vpop.f32.mrf.mxu0 }
 0x187   : > { %v724_v58 = vpack.c.b16 %v704_v53, %v703_v50  ;;  %v566_v60 = vadd.f32 %v2868_v16, %v565_v56 }
 0x189   : > { %981 = vrot.lane.b32.xlu2 %v724_v58, %s2691_s20  ;;  %v814_v63 = vshrl.u32 %v724_v58, 16  ;;  %v817_v3 = vshll.u32 %v724_v58, 16  ;;  %v609_v10 = vmax.f32 %v566_v60, 0.0 }
 0x18b   : > { %v909_v6 = vrot.slane %v817_v3, 1  ;;  %v816_v8 = vrot.slane %v814_v63, 7  ;;  %v641_v25 = vpack.c.bf16 %v609_v10, %v609_v10 }
 0x18d   : > { %v910_v12 = vor.u32 %v909_v6, %v814_v63  ;;  %v3016_v15 = vor.u32 %v817_v3, %v816_v8  ;;  %v705_v29 = vunpack.c.l.b16 %v641_v25 }
 0x18e   : > { %v567_v20 = vpop.f32.mrf.mxu0 }
 0x18f   : > { %v568_v22 = vadd.f32 %v2868_v16, %v567_v20  ;;  %v951_v24 = vsel %vm2998_vm2, %v910_v12, 0 }
 0x191   : > { %v610_v26 = vmax.f32 %v568_v22, 0.0  ;;  %1032 = vrot.lane.b32.xlu2 %v951_v24, %s2692_s9 }
 0x193   : > { %v642_v27 = vpack.c.bf16 %v610_v26, %v610_v26 }
 0x195   : > { %v706_v31 = vunpack.c.l.b16 %v642_v27 }
 0x196   : > { %v570_v40 = vpop.f32.mrf.mxu0 }
 0x197   : > { %v725_v43 = vpack.c.b16 %v706_v31, %v705_v29  ;;  %v571_v45 = vadd.f32 %v2868_v16, %v570_v40 }
 0x199   : > { %983 = vrot.lane.b32.xlu0 %v725_v43, %s2691_s20  ;;  %v821_v50 = vshrl.u32 %v725_v43, 16  ;;  %v824_v53 = vshll.u32 %v725_v43, 16  ;;  %v611_v60 = vmax.f32 %v571_v45, 0.0 }
 0x19b   : > { %v823_v56 = vrot.slane %v821_v50, 7  ;;  %v911_v58 = vrot.slane %v824_v53, 1  ;;  %v643_v12 = vpack.c.bf16 %v611_v60, %v611_v60  ;;  %v2410_v60 = vld [vmem:[%s3575_s3 + $0x40] sm:$0xff] }
 0x19c   : > { %1228 = vmatpush.bf16.msrb.mxu0 %v2410_v60  ;;  %2528 = vmatpush.bf16.msra.mxu2 %v2410_v60 }
 0x19d   : > { %v912_v63 = vor.u32 %v911_v58, %v821_v50  ;;  %v3027_v3 = vor.u32 %v824_v53, %v823_v56  ;;  %v707_v24 = vunpack.c.l.b16 %v643_v12  ;;  %2529 = vmatpush.bf16.msra.mxu3 %v2410_v60  ;;  %2527 = vmatpush.bf16.msra.mxu1 %v2410_v60  ;;  %v2408_v60 = vld [vmem:[%s3575_s3 + $0x30] sm:$0xff] }
 0x19e   : > { %v572_v6 = vpop.f32.mrf.mxu0 }
 0x19f   : > { %v573_v8 = vadd.f32 %v2868_v16, %v572_v6  ;;  %v952_v10 = vsel %vm2998_vm2, %v912_v63, 0 }
 0x1a0   : > { %1034 = vrot.lane.b32.xlu1 %v952_v10, %s2692_s9 }
 0x1a1   : > { %v612_v20 = vmax.f32 %v573_v8, 0.0 }
 0x1a3   : > { %v644_v22 = vpack.c.bf16 %v612_v20, %v612_v20 }
 0x1a5   : > { %v708_v25 = vunpack.c.l.b16 %v644_v22 }
 0x1a6   : > { %v575_v26 = vpop.f32.mrf.mxu0 }
 0x1a7   : > { %v726_v27 = vpack.c.b16 %v708_v25, %v707_v24  ;;  %v576_v29 = vadd.f32 %v2868_v16, %v575_v26 }
 0x1a9   : > { %985 = vrot.lane.b32.xlu1 %v726_v27, %s2691_s20  ;;  %v828_v31 = vshrl.u32 %v726_v27, 16  ;;  %v831_v40 = vshll.u32 %v726_v27, 16  ;;  %v613_v43 = vmax.f32 %v576_v29, 0.0 }
 0x1ab   : > { %v830_v35 = vrot.slane %v828_v31, 7  ;;  %v645_v56 = vpack.c.bf16 %v613_v43, %v613_v43  ;;  %v913_v20 = vrot.slane %v831_v40, 1 }
 0x1ad   : > { %v3035_v45 = vor.u32 %v831_v40, %v830_v35  ;;  %v709_v6 = vunpack.c.l.b16 %v645_v56  ;;  %v914_v29 = vor.u32 %v913_v20, %v828_v31  ;;  %v2409_v35 = vld [vmem:[%s3575_s3 + $0x38] sm:$0xff]  ;;  %v889_v20 = vrot.slane %v747_v49, 1 }
 0x1ae   : > { %v577_v50 = vpop.f32.mrf.mxu0  ;;  %2531 = vmatpush.bf16.msra.mxu2 %v2409_v35  ;;  %1229 = vmatpush.bf16.msrb.mxu0 %v2409_v35 }
 0x1af   : > { %v578_v53 = vadd.f32 %v2868_v16, %v577_v50  ;;  %2532 = vmatpush.bf16.msra.mxu3 %v2409_v35  ;;  %2530 = vmatpush.bf16.msra.mxu1 %v2409_v35  ;;  %v953_v31 = vsel %vm2998_vm2, %v914_v29, 0  ;;  %v890_v35 = vor.u32 %v889_v20, %v744_v48  ;;  %v887_v48 = vrot.slane %v740_v33, 1 }
 0x1b1   : > { %v614_v58 = vmax.f32 %v578_v53, 0.0 }
 0x1b2   : > { %2534 = vmatpush.bf16.msra.mxu2 %v2408_v60  ;;  %1230 = vmatpush.bf16.msrb.mxu0 %v2408_v60 }
 0x1b3   : > { %v646_v63 = vpack.c.bf16 %v614_v58, %v614_v58  ;;  %2535 = vmatpush.bf16.msra.mxu3 %v2408_v60  ;;  %2533 = vmatpush.bf16.msra.mxu1 %v2408_v60 }
 0x1b5   : > { %v710_v8 = vunpack.c.l.b16 %v646_v63 }
 0x1b6   : > { %v580_v10 = vpop.f32.mrf.mxu0 }
 0x1b7   : > { %v727_v12 = vpack.c.b16 %v710_v8, %v709_v6  ;;  %v581_v22 = vadd.f32 %v2868_v16, %v580_v10 }
 0x1b9   : > { %987 = vrot.lane.b32.xlu2 %v727_v12, %s2691_s20  ;;  %v835_v24 = vshrl.u32 %v727_v12, 16  ;;  %v838_v25 = vshll.u32 %v727_v12, 16  ;;  %v615_v43 = vmax.f32 %v581_v22, 0.0  ;;  %v2693_v22 = vmov 0  }
 0x1bb   : > { %v837_v26 = vrot.slane %v835_v24, 7  ;;  %v915_v27 = vrot.slane %v838_v25, 1  ;;  %v647_v63 = vpack.c.bf16 %v615_v43, %v615_v43 }
 0x1bd   : > { %v916_v50 = vor.u32 %v915_v27, %v835_v24  ;;  %v3046_v53 = vor.u32 %v838_v25, %v837_v26  ;;  %v711_v8 = vunpack.c.l.b16 %v647_v63  ;;  %v885_v26 = vrot.slane %v2693_v22, 1 }
 0x1be   : > { %v582_v56 = vpop.f32.mrf.mxu0  ;;  %v888_v63 = vor.u32 %v887_v48, %v737_v32  ;;  %v2403_v48 = vld [vmem:[%s3575_s3 + $0x8] sm:$0xff] }
 0x1bf   : > { %v583_v40 = vadd.f32 %v2868_v16, %v582_v56  ;;  %v954_v58 = vsel %vm2998_vm2, %v916_v50, 0  ;;  %v939_v49 = vsel %vm2998_vm2, %v885_v26, 0  ;;  %v901_v26 = vrot.slane %v789_v44, 1  ;;  %v2405_v44 = vld [vmem:[%s3575_s3 + $0x18] sm:$0xff] }
 0x1c0   : > { %1038 = vrot.lane.b32.xlu0 %v954_v58, %s2692_s9  ;;  %v893_v58 = vrot.slane %v761_v19, 1 }
 0x1c1   : > { %v616_v6 = vmax.f32 %v583_v40, 0.0  ;;  %1036 = vrot.lane.b32.xlu2 %v953_v31, %s2692_s9  ;;  %v941_v40 = vsel %vm2998_vm2, %v890_v35, 0  ;;  %v891_v31 = vrot.slane %v754_v2, 1  ;;  %v940_v2 = vsel %vm2998_vm2, %v888_v63, 0 }
 0x1c2   : > { %v894_v33 = vor.u32 %v893_v58, %v758_v17 }
 0x1c3   : > { %v648_v16 = vpack.c.bf16 %v616_v6, %v616_v6 }
 0x1c4   : > { %v943_v19 = vsel %vm2998_vm2, %v894_v33, 0  ;;  %v882_v33 = vsel %vm3102_vm6, 0, %v3035_v45  ;;  %v2414_v45 = vld [vmem:[%s3575_s3 + $0x60] sm:$0xff] }
 0x1c5   : > { %v712_v10 = vunpack.c.l.b16 %v648_v16 }
 0x1c7   : > { %v728_v12 = vpack.c.b16 %v712_v10, %v711_v8  ;;  %v895_v8 = vrot.slane %v768_v39, 1  ;;  %v897_v10 = vrot.slane %v775_v59, 1  ;;  %v2406_v59 = vld [vmem:[%s3575_s3 + $0x20] sm:$0xff] }
 0x1c9   : > { %957 = vrot.lane.b32.xlu2 %v2693_v22, %s2691_s20  ;;  %989 = vrot.lane.b32.xlu0 %v728_v12, %s2691_s20  ;;  %v842_v24 = vshrl.u32 %v728_v12, 16  ;;  %v845_v25 = vshll.u32 %v728_v12, 16  ;;  %v896_v20 = vor.u32 %v895_v8, %v765_v37 }
 0x1cb   : > { %v844_v27 = vrot.slane %v842_v24, 7  ;;  %v917_v29 = vrot.slane %v845_v25, 1 }
 0x1cd   : > { %v918_v43 = vor.u32 %v917_v29, %v842_v24  ;;  %v3066_v50 = vor.u32 %v845_v25, %v844_v27  ;;  %v903_v27 = vrot.slane %v796_v7, 1 }
 0x1cf   : > { %v955_v56 = vsel %vm2998_vm2, %v918_v43, 0  ;;  %v904_v29 = vor.u32 %v903_v27, %v793_v5  ;;  %v2404_v5 = vld [vmem:[%s3575_s3 + $0x10] sm:$0xff]  ;;  %v881_v43 = vsel %vm3102_vm6, 0, %v3027_v3  ;;  %v2418_v3 = vld [vmem:[%s3575_s3 + $0x80] sm:$0xff] }
 0x1d0   : > { %1040 = vrot.lane.b32.xlu1 %v955_v56, %s2692_s9 }
 0x1d1   : > { %1008 = vrot.lane.b32.xlu0 %v939_v49, %s2692_s9  ;;  %1012 = vrot.lane.b32.xlu2 %v941_v40, %s2692_s9  ;;  %v948_v7 = vsel %vm2998_vm2, %v904_v29, 0  ;;  %v2419_v40 = vld [vmem:[%s3575_s3 + $0x88] sm:$0xff] }
 0x1d2   : > { %1490 = vmatpush.bf16.msrb.mxu3 %v2419_v40 }
 0x1d6   : > { %1491 = vmatpush.bf16.msrb.mxu3 %v2418_v3  ;;  %v874_v3 = vsel %vm3102_vm6, 0, %v2948_v61 }
 0x1d8   : > { %961 = vrot.lane.b32.xlu1 %v2887_v46, %s2691_s20  ;;  %v892_v46 = vor.u32 %v891_v31, %v751_v0  ;;  %v878_v0 = vsel %vm3102_vm6, 0, %v2996_v51  ;;  %v899_v51 = vrot.slane %v782_v18, 1  ;;  %v944_v18 = vsel %vm2998_vm2, %v896_v20, 0  ;;  %v2417_v31 = vld [vmem:[%s3575_s3 + $0x78] sm:$0xff] }
 0x1d9   : > { %963 = vrot.lane.b32.xlu2 %v2900_v62, %s2691_s20  ;;  %959 = vrot.lane.b32.xlu0 %v2874_v30, %s2691_s20  ;;  %v2407_v62 = vld [vmem:[%s3575_s3 + $0x28] sm:$0xff] }
 0x1da   : > { %v942_v30 = vsel %vm2998_vm2, %v892_v46, 0  ;;  %1352 = vmatpush.bf16.msrb.mxu2 %v2407_v62  ;;  %v900_v39 = vor.u32 %v899_v51, %v779_v13  ;;  %1492 = vmatpush.bf16.msrb.mxu3 %v2417_v31  ;;  %v2415_v62 = vld [vmem:[%s3575_s3 + $0x68] sm:$0xff]  ;;  %v732_v51 = vrot.slane %v2693_v22, 7 }
 0x1db   : > { %v978_v60 = vpop.permute.xlu0 %977 }
 0x1dc   : > { %v1075_v17 = vsel %vm1042_vm5, %v878_v0, %v978_v60  ;;  %v2402_v60 = vld [vmem:[%s3575_s3] sm:$0xff]  ;;  %v883_v0 = vsel %vm3102_vm6, 0, %v3046_v53  ;;  %v884_v53 = vsel %vm3102_vm6, 0, %v3066_v50  ;;  %v870_v50 = vsel %vm3102_vm6, 0, %v2896_v52 }
 0x1de   : > { %1353 = vmatpush.bf16.msrb.mxu2 %v2406_v59 }
 0x1e0   : > { %1010 = vrot.lane.b32.xlu1 %v940_v2, %s2692_s9 }
 0x1e1   : > { %1016 = vrot.lane.b32.xlu2 %v943_v19, %s2692_s9  ;;  %1014 = vrot.lane.b32.xlu0 %v942_v30, %s2692_s9  ;;  %v2416_v30 = vld [vmem:[%s3575_s3 + $0x70] sm:$0xff] }
 0x1e2   : > { %1354 = vmatpush.bf16.msrb.mxu2 %v2405_v44  ;;  %1493 = vmatpush.bf16.msrb.mxu3 %v2416_v30 }
 0x1e3   : > { %v1029_v6 = vpop.permute.xlu0 %1028  ;;  %v982_v25 = vpop.permute.xlu2 %981 }
 0x1e4   : > { %v3116_v16 = vsel %vm1094_vm7, %v1075_v17, %v1029_v6 }
 0x1e5   : > { %2249 = vmatmul.msk.bf16.vlgmr.msra.gmra.mxu2 %vm1190_vm8, %v3116_v16 }
 0x1e6   : > { %1355 = vmatpush.bf16.msrb.mxu2 %v2404_v5  ;;  %1494 = vmatpush.bf16.msrb.mxu3 %v2415_v62 }
 0x1e8   : > { %965 = vrot.lane.b32.xlu1 %v2913_v14, %s2691_s20  ;;  %v898_v14 = vor.u32 %v897_v10, %v772_v57 }
 0x1e9   : > { %969 = vrot.lane.b32.xlu2 %v2939_v55, %s2691_s20  ;;  %967 = vrot.lane.b32.xlu0 %v2926_v34, %s2691_s20  ;;  %v946_v34 = vsel %vm2998_vm2, %v900_v39, 0  ;;  %v879_v55 = vsel %vm3102_vm6, 0, %v3008_v28  ;;  %v902_v28 = vor.u32 %v901_v26, %v786_v42 }
 0x1ea   : > { %v945_v37 = vsel %vm2998_vm2, %v898_v14, 0  ;;  %1356 = vmatpush.bf16.msrb.mxu2 %v2403_v48  ;;  %1495 = vmatpush.bf16.msrb.mxu3 %v2414_v45 }
 0x1eb   : > { %v980_v12 = vpop.permute.xlu1 %979  ;;  %v1033_v35 = vpop.permute.xlu2 %1032 }
 0x1ec   : > { %v1078_v57 = vsel %vm1042_vm5, %v879_v55, %v980_v12  ;;  %v868_v12 = vsel %vm3102_vm6, 0, %v732_v51 }
 0x1ee   : > { %1357 = vmatpush.bf16.msrb.mxu2 %v2402_v60 }
 0x1f0   : > { %1018 = vrot.lane.b32.xlu1 %v944_v18, %s2692_s9 }
 0x1f1   : > { %1022 = vrot.lane.b32.xlu2 %v946_v34, %s2692_s9  ;;  %1020 = vrot.lane.b32.xlu0 %v945_v37, %s2692_s9 }
 0x1f3   : > { %v1031_v13 = vpop.permute.xlu1 %1030 }
 0x1f4   : > { %v3155_v24 = vsel %vm1094_vm7, %v1078_v57, %v1031_v13 }
 0x1f5   : > { %2250 = vmatmul.msk.bf16.gmra.mxu2 %vm1190_vm8, %v3155_v24 }
 0x1f8   : > { %971 = vrot.lane.b32.xlu1 %v2952_v11, %s2691_s20  ;;  %v947_v11 = vsel %vm2998_vm2, %v902_v28, 0 }
 0x1f9   : > { %975 = vrot.lane.b32.xlu2 %v2979_v1, %s2691_s20  ;;  %973 = vrot.lane.b32.xlu0 %v2967_v38, %s2691_s20  ;;  %v880_v38 = vsel %vm3102_vm6, 0, %v3016_v15 }
 0x1fa   : > { %v1081_v42 = vsel %vm1042_vm5, %v880_v38, %v982_v25  ;;  %v869_v25 = vsel %vm3102_vm6, 0, %v2883_v36  ;;  %v873_v36 = vsel %vm3102_vm6, 0, %v2935_v41 }
 0x1fb   : > { %v3187_v1 = vsel %vm1094_vm7, %v1081_v42, %v1033_v35  ;;  %v871_v35 = vsel %vm3102_vm6, 0, %v2909_v4 }
 0x200   : > { %1024 = vrot.lane.b32.xlu1 %v947_v11, %s2692_s9 }
 0x201   : > { %1026 = vrot.lane.b32.xlu0 %v948_v7, %s2692_s9 }
 0x205   : > { %2251 = vmatmul.msk.bf16.gmra.mxu2 %vm1190_vm8, %v3187_v1 }
 0x20b   : > { %v984_v54 = vpop.permute.xlu0 %983 }
 0x20c   : > { %v1084_v15 = vsel %vm1042_vm5, %v881_v43, %v984_v54 }
 0x212   : > { %v1035_v49 = vpop.permute.xlu1 %1034 }
 0x213   : > { %v3199_v56 = vsel %vm1094_vm7, %v1084_v15, %v1035_v49  ;;  %v988_v58 = vpop.permute.xlu2 %987  ;;  %v872_v49 = vsel %vm3102_vm6, 0, %v2922_v21  ;;  %v2421_v21 = vld [vmem:[%s3577_s5 + $0x8] sm:$0xff] }
 0x214   : > { %v1090_v17 = vsel %vm1042_vm5, %v883_v0, %v988_v58  ;;  %1767 = vmatpush.bf16.msrb.mxu1 %v2421_v21 }
 0x215   : > { %2252 = vmatmul.msk.bf16.gmra.mxu2 %vm1190_vm8, %v3199_v56 }
 0x21b   : > { %v986_v63 = vpop.permute.xlu1 %985  ;;  %v1037_v46 = vpop.permute.xlu2 %1036 }
 0x21c   : > { %v1087_v2 = vsel %vm1042_vm5, %v882_v33, %v986_v63 }
 0x21d   : > { %v3223_v19 = vsel %vm1094_vm7, %v1087_v2, %v1037_v46  ;;  %v875_v46 = vsel %vm3102_vm6, 0, %v2964_v23  ;;  %v876_v23 = vsel %vm3102_vm6, 0, %v2976_v47  ;;  %v877_v47 = vsel %vm3102_vm6, 0, %v2988_v9 }
 0x223   : > { %v958_v20 = vpop.permute.xlu2 %957 }
 0x224   : > { %v1045_v39 = vsel %vm1042_vm5, %v868_v12, %v958_v20 }
 0x225   : > { %2253 = vmatmul.msk.bf16.gmra.mxu2 %vm1190_vm8, %v3223_v19 }
 0x22b   : > { %v1013_v13 = vpop.permute.xlu2 %1012 }
 0x232   : > { %v1039_v6 = vpop.permute.xlu0 %1038 }
 0x233   : > { %v3241_v8 = vsel %vm1094_vm7, %v1090_v17, %v1039_v6  ;;  %v964_v11 = vpop.permute.xlu2 %963 }
 0x234   : > { %2254 = vmatmul.msk.bf16.vlgmr.msra.gmra.mxu3 %vm1190_vm8, %v3241_v8  ;;  %v1054_v5 = vsel %vm1042_vm5, %v871_v35, %v964_v11 }
 0x23b   : > { %v990_v10 = vpop.permute.xlu0 %989  ;;  %v1017_v15 = vpop.permute.xlu2 %1016 }
 0x23c   : > { %v1093_v14 = vsel %vm1042_vm5, %v884_v53, %v990_v10 }
 0x242   : > { %v1041_v59 = vpop.permute.xlu1 %1040 }
 0x243   : > { %v1009_v18 = vpop.permute.xlu0 %1008  ;;  %v3254_v34 = vsel %vm1094_vm7, %v1093_v14, %v1041_v59  ;;  %v970_v4 = vpop.permute.xlu2 %969 }
 0x244   : > { %v3257_v22 = vsel %vm1094_vm7, %v1045_v39, %v1009_v18  ;;  %2255 = vmatmul.msk.bf16.gmra.mxu3 %vm1190_vm8, %v3254_v34  ;;  %v1063_v31 = vsel %vm1042_vm5, %v874_v3, %v970_v4  ;;  %v2420_v39 = vld [vmem:[%s3577_s5] sm:$0xff] }
 0x245   : > { %2280 = vmatmul.msk.bf16.vlgmr.msrb.gmra.mxu2 %vm1190_vm8, %v3257_v22  ;;  %1768 = vmatpush.bf16.msrb.mxu1 %v2420_v39 }
 0x24a   : > { %v962_v37 = vpop.permute.xlu1 %961 }
 0x24b   : > { %v960_v55 = vpop.permute.xlu0 %959  ;;  %v1051_v57 = vsel %vm1042_vm5, %v870_v50, %v962_v37  ;;  %v1023_v30 = vpop.permute.xlu2 %1022 }
 0x24c   : > { %v1048_v26 = vsel %vm1042_vm5, %v869_v25, %v960_v55  ;;  %v1100_v29 = vsel %vm1094_vm7, %v1051_v57, %v1013_v13 }
 0x252   : > { %v1011_v27 = vpop.permute.xlu1 %1010 }
 0x253   : > { %v1098_v28 = vsel %vm1094_vm7, %v1048_v26, %v1011_v27  ;;  %v1015_v44 = vpop.permute.xlu0 %1014  ;;  %v976_v20 = vpop.permute.xlu2 %975 }
 0x254   : > { %2240 = vmatmul.msk.bf16.vlgmr.msrb.gmra.mxu0 %vm1190_vm8, %v1098_v28  ;;  %2332 = vmatmul.msk.bf16.vlgmr.msrb.gmra.mxu3 %vm1190_vm8, %v1100_v29  ;;  %v1102_v43 = vsel %vm1094_vm7, %v1054_v5, %v1015_v44  ;;  %v1072_v14 = vsel %vm1042_vm5, %v877_v47, %v976_v20 }
 0x255   : > { %2281 = vmatmul.msk.bf16.gmra.mxu2 %vm1190_vm8, %v1098_v28 }
 0x25a   : > { %v966_v52 = vpop.permute.xlu1 %965 }
 0x25b   : > { %v968_v7 = vpop.permute.xlu0 %967  ;;  %v1057_v58 = vsel %vm1042_vm5, %v872_v49, %v966_v52 }
 0x25c   : > { %v1060_v38 = vsel %vm1042_vm5, %v873_v36, %v968_v7  ;;  %v1104_v63 = vsel %vm1094_vm7, %v1057_v58, %v1017_v15  ;;  %v3373_v7 = vld [vmem:[%s3576_s4] ss:$0 sm:$0xff] }
 0x262   : > { %v1019_v42 = vpop.permute.xlu1 %1018 }
 0x263   : > { %v1106_v54 = vsel %vm1094_vm7, %v1060_v38, %v1019_v42  ;;  %v1021_v40 = vpop.permute.xlu0 %1020 }
 0x264   : > { %2241 = vmatmul.msk.bf16.gmra.mxu0 %vm1190_vm8, %v1100_v29  ;;  %2244 = vmatmul.msk.bf16.vlgmr.msra.gmra.mxu1 %vm1190_vm8, %v1106_v54  ;;  %v1108_v60 = vsel %vm1094_vm7, %v1063_v31, %v1021_v40 }
 0x265   : > { %2333 = vmatmul.msk.bf16.gmra.mxu3 %vm1190_vm8, %v1102_v43  ;;  %2282 = vmatmul.msk.bf16.gmra.mxu2 %vm1190_vm8, %v1100_v29 }
 0x268   : > { %v3290_v41 = vpop.f32.mrf.mxu2 }
 0x26a   : > { %v972_v33 = vpop.permute.xlu1 %971 }
 0x26b   : > { %v1066_v2 = vsel %vm1042_vm5, %v875_v46, %v972_v33  ;;  %v974_v17 = vpop.permute.xlu0 %973 }
 0x26c   : > { %v1110_v62 = vsel %vm1094_vm7, %v1066_v2, %v1023_v30  ;;  %v1069_v51 = vsel %vm1042_vm5, %v876_v23, %v974_v17 }
 0x270   : > { %v3295_v48 = vpop.f32.mrf.mxu2 }
 0x272   : > { %v1025_v6 = vpop.permute.xlu1 %1024 }
 0x273   : > { %v1112_v10 = vsel %vm1094_vm7, %v1069_v51, %v1025_v6  ;;  %v1027_v53 = vpop.permute.xlu0 %1026 }
 0x274   : > { %2242 = vmatmul.msk.bf16.gmra.mxu0 %vm1190_vm8, %v1102_v43  ;;  %2245 = vmatmul.msk.bf16.gmra.mxu1 %vm1190_vm8, %v1108_v60  ;;  %v1114_v18 = vsel %vm1094_vm7, %v1072_v14, %v1027_v53 }
 0x275   : > { %2334 = vmatmul.msk.bf16.gmra.mxu3 %vm1190_vm8, %v1104_v63  ;;  %2283 = vmatmul.msk.bf16.gmra.mxu2 %vm1190_vm8, %v1102_v43 }
 0x278   : > { %v3311_v61 = vpop.f32.mrf.mxu2 }
 0x280   : > { %v3318_v45 = vpop.f32.mrf.mxu2 }
 0x284   : > { %2243 = vmatmul.msk.bf16.gmra.mxu0 %vm1190_vm8, %v1104_v63  ;;  %2246 = vmatmul.msk.bf16.gmra.mxu1 %vm1190_vm8, %v1110_v62 }
 0x285   : > { %2335 = vmatmul.msk.bf16.gmra.mxu3 %vm1190_vm8, %v1106_v54  ;;  %2284 = vmatmul.msk.bf16.gmra.mxu2 %vm1190_vm8, %v1104_v63 }
 0x288   : > { %v3324_v0 = vpop.f32.mrf.mxu2 }
 0x290   : > { %v3334_v12 = vpop.f32.mrf.mxu2 }
 0x294   : > { %2247 = vmatmul.msk.bf16.gmra.mxu1 %vm1190_vm8, %v1112_v10 }
 0x295   : > { %2336 = vmatmul.msk.bf16.gmra.mxu3 %vm1190_vm8, %v1108_v60  ;;  %2285 = vmatmul.msk.bf16.gmra.mxu2 %vm1190_vm8, %v1106_v54 }
 0x298   : > { %v3343_v59 = vpop.f32.mrf.mxu2 }
 0x2a0   : > { %v3349_v37 = vpop.f32.mrf.mxu2 }
 0x2a4   : > { %2248 = vmatmul.msk.bf16.gmra.mxu1 %vm1190_vm8, %v1114_v18 }
 0x2a5   : > { %2337 = vmatmul.msk.bf16.gmra.mxu3 %vm1190_vm8, %v1110_v62  ;;  %2286 = vmatmul.msk.bf16.gmra.mxu2 %vm1190_vm8, %v1108_v60 }
 0x2a8   : > { %v3353_v9 = vpop.f32.mrf.mxu2 }
 0x2b0   : > { %v3359_v50 = vpop.f32.mrf.mxu2 }
 0x2b5   : > { %2338 = vmatmul.msk.bf16.gmra.mxu3 %vm1190_vm8, %v1112_v10  ;;  %2287 = vmatmul.msk.bf16.gmra.mxu2 %vm1190_vm8, %v1110_v62 }
 0x2b7   : > { %v3355_v32 = vpop.f32.mrf.mxu3 }
 0x2bf   : > { %v3357_v55 = vpop.f32.mrf.mxu3 }
 0x2c5   : > { %2339 = vmatmul.msk.bf16.gmra.mxu3 %vm1190_vm8, %v1114_v18  ;;  %2288 = vmatmul.msk.bf16.gmra.mxu2 %vm1190_vm8, %v1112_v10 }
 0x2c7   : > { %v3363_v57 = vpop.f32.mrf.mxu3 }
 0x2c8   : > { %v1359_v13 = vpop.f32.mrf.mxu2 }
 0x2cf   : > { %v3365_v25 = vpop.f32.mrf.mxu3 }
 0x2d0   : > { %v1361_v26 = vpop.f32.mrf.mxu2 }
 0x2d1   : > { %v1232_v27 = vpop.f32.mrf.mxu0 }
 0x2d2   : > { %v1360_v52 = vadd.f32 %v1359_v13, %v1232_v27 }
 0x2d5   : > { %2340 = vmatmul.msk.bf16.gmra.mxu3 %vm1190_vm8, %v3116_v16  ;;  %2289 = vmatmul.msk.bf16.gmra.mxu2 %vm1190_vm8, %v1114_v18 }
 0x2d7   : > { %v1497_v28 = vpop.f32.mrf.mxu3 }
 0x2d8   : > { %v1364_v29 = vpop.f32.mrf.mxu2  ;;  %v1577_v11 = vadd.f32 %v1497_v28, %v1360_v52 }
 0x2d9   : > { %v1234_v44 = vpop.f32.mrf.mxu0 }
 0x2da   : > { %v1362_v36 = vadd.f32 %v1361_v26, %v1234_v44  ;;  %v1613_v38 = vadd.f32 %v3373_v7, %v1577_v11 }
 0x2dc   : > { %v1645_v15 = vmax.f32 %v1613_v38, 0.0 }
 0x2df   : > { %v1499_v35 = vpop.f32.mrf.mxu3 }
 0x2e0   : > { %v1578_v42 = vadd.f32 %v1499_v35, %v1362_v36  ;;  %v1366_v5 = vpop.f32.mrf.mxu2 }
 0x2e1   : > { %v1237_v54 = vpop.f32.mrf.mxu0  ;;  %v1252_v27 = vpop.f32.mrf.mxu1 }
 0x2e2   : > { %v1614_v43 = vadd.f32 %v3373_v7, %v1578_v42  ;;  %v1365_v31 = vadd.f32 %v1364_v29, %v1237_v54 }
 0x2e4   : > { %v1646_v4 = vmax.f32 %v1614_v43, 0.0 }
 0x2e5   : > { %2341 = vmatmul.msk.bf16.gmra.mxu3 %vm1190_vm8, %v3155_v24  ;;  %2290 = vmatmul.msk.bf16.gmra.mxu2 %vm1190_vm8, %v3116_v16 }
 0x2e6   : > { %v1677_v49 = vpack.c.bf16 %v1646_v4, %v1645_v15 }
 0x2e8   : > { %v1502_v40 = vpop.f32.mrf.mxu3  ;;  %v1369_v3 = vpop.f32.mrf.mxu2  ;;  %2356 = vmatmul.msk.bf16.vlgmr.msrb.gmra.mxu1 %vm1042_vm5, %v1677_v49 }
 0x2e9   : > { %v1239_v58 = vpop.f32.mrf.mxu0  ;;  %v1579_v60 = vadd.f32 %v1502_v40, %v1365_v31  ;;  %v1254_v38 = vpop.f32.mrf.mxu1 }
 0x2ea   : > { %v1367_v63 = vadd.f32 %v1366_v5, %v1239_v58 }
 0x2eb   : > { %v1615_v46 = vadd.f32 %v3373_v7, %v1579_v60 }
 0x2ed   : > { %v1647_v17 = vmax.f32 %v1615_v46, 0.0 }
 0x2f0   : > { %v1504_v21 = vpop.f32.mrf.mxu3  ;;  %v1371_v33 = vpop.f32.mrf.mxu2 }
 0x2f1   : > { %v1580_v2 = vadd.f32 %v1504_v21, %v1367_v63  ;;  %v1242_v30 = vpop.f32.mrf.mxu0 }
 0x2f2   : > { %v1370_v20 = vadd.f32 %v1369_v3, %v1242_v30 }
 0x2f3   : > { %v1616_v62 = vadd.f32 %v3373_v7, %v1580_v2 }
 0x2f5   : > { %v1648_v6 = vmax.f32 %v1616_v62, 0.0  ;;  %2342 = vmatmul.msk.bf16.gmra.mxu3 %vm1190_vm8, %v3187_v1  ;;  %2291 = vmatmul.msk.bf16.gmra.mxu2 %vm1190_vm8, %v3155_v24 }
 0x2f7   : > { %v1678_v16 = vpack.c.bf16 %v1648_v6, %v1647_v17 }
 0x2f8   : > { %v1507_v23 = vpop.f32.mrf.mxu3  ;;  %v1374_v51 = vpop.f32.mrf.mxu2 }
 0x2f9   : > { %2357 = vmatmul.msk.bf16.gmra.mxu1 %vm1042_vm5, %v1678_v16  ;;  %v1244_v10 = vpop.f32.mrf.mxu0  ;;  %v1581_v39 = vadd.f32 %v1507_v23, %v1370_v20 }
 0x2fa   : > { %v1372_v53 = vadd.f32 %v1371_v33, %v1244_v10 }
 0x2fb   : > { %v1617_v18 = vadd.f32 %v3373_v7, %v1581_v39 }
 0x2fd   : > { %v1649_v29 = vmax.f32 %v1617_v18, 0.0 }
 0x300   : > { %v1509_v47 = vpop.f32.mrf.mxu3  ;;  %v1376_v14 = vpop.f32.mrf.mxu2 }
 0x301   : > { %v1582_v13 = vadd.f32 %v1509_v47, %v1372_v53  ;;  %v1247_v26 = vpop.f32.mrf.mxu0 }
 0x302   : > { %v1375_v36 = vadd.f32 %v1374_v51, %v1247_v26 }
 0x303   : > { %v1618_v28 = vadd.f32 %v3373_v7, %v1582_v13 }
 0x305   : > { %v1650_v24 = vmax.f32 %v1618_v28, 0.0  ;;  %2343 = vmatmul.msk.bf16.gmra.mxu3 %vm1190_vm8, %v3199_v56  ;;  %2292 = vmatmul.msk.bf16.gmra.mxu2 %vm1190_vm8, %v3187_v1  ;;  %v1257_v1 = vpop.f32.mrf.mxu1 }
 0x307   : > { %v1679_v44 = vpack.c.bf16 %v1650_v24, %v1649_v29 }
 0x308   : > { %v1512_v52 = vpop.f32.mrf.mxu3  ;;  %v1379_v11 = vpop.f32.mrf.mxu2 }
 0x309   : > { %2358 = vmatmul.msk.bf16.gmra.mxu1 %vm1042_vm5, %v1679_v44  ;;  %v1249_v35 = vpop.f32.mrf.mxu0  ;;  %v1583_v42 = vadd.f32 %v1512_v52, %v1375_v36  ;;  %v1380_v63 = vadd.f32 %v1379_v11, %v1252_v27 }
 0x30a   : > { %v1377_v5 = vadd.f32 %v1376_v14, %v1249_v35 }
 0x30b   : > { %v1619_v15 = vadd.f32 %v3373_v7, %v1583_v42 }
 0x30d   : > { %v1651_v40 = vmax.f32 %v1619_v15, 0.0  ;;  %v1259_v30 = vpop.f32.mrf.mxu1 }
 0x310   : > { %v1514_v54 = vpop.f32.mrf.mxu3  ;;  %v1381_v43 = vpop.f32.mrf.mxu2 }
 0x311   : > { %v1584_v4 = vadd.f32 %v1514_v54, %v1377_v5  ;;  %v1382_v33 = vadd.f32 %v1381_v43, %v1254_v38 }
 0x313   : > { %v1620_v49 = vadd.f32 %v3373_v7, %v1584_v4 }
 0x315   : > { %v1652_v3 = vmax.f32 %v1620_v49, 0.0  ;;  %2344 = vmatmul.msk.bf16.gmra.mxu3 %vm1190_vm8, %v3223_v19  ;;  %2293 = vmatmul.msk.bf16.gmra.mxu2 %vm1190_vm8, %v3199_v56  ;;  %v1262_v20 = vpop.f32.mrf.mxu1 }
 0x317   : > { %v1680_v58 = vpack.c.bf16 %v1652_v3, %v1651_v40 }
 0x318   : > { %v1517_v31 = vpop.f32.mrf.mxu3  ;;  %v1384_v60 = vpop.f32.mrf.mxu2 }
 0x319   : > { %2359 = vmatmul.msk.bf16.gmra.mxu1 %vm1042_vm5, %v1680_v58  ;;  %v1585_v21 = vadd.f32 %v1517_v31, %v1380_v63  ;;  %v1385_v39 = vadd.f32 %v1384_v60, %v1257_v1 }
 0x31b   : > { %v1621_v62 = vadd.f32 %v3373_v7, %v1585_v21 }
 0x31d   : > { %v1653_v16 = vmax.f32 %v1621_v62, 0.0  ;;  %v1264_v28 = vpop.f32.mrf.mxu1 }
 0x320   : > { %v1519_v46 = vpop.f32.mrf.mxu3  ;;  %v1386_v2 = vpop.f32.mrf.mxu2 }
 0x321   : > { %v1586_v17 = vadd.f32 %v1519_v46, %v1382_v33  ;;  %v1387_v47 = vadd.f32 %v1386_v2, %v1259_v30 }
 0x323   : > { %v1622_v6 = vadd.f32 %v3373_v7, %v1586_v17 }
 0x325   : > { %v1654_v23 = vmax.f32 %v1622_v6, 0.0  ;;  %2345 = vmatmul.msk.bf16.gmra.mxu3 %vm1190_vm8, %v3241_v8  ;;  %2294 = vmatmul.msk.bf16.gmra.mxu2 %vm1190_vm8, %v3223_v19  ;;  %v1267_v35 = vpop.f32.mrf.mxu1 }
 0x327   : > { %v1681_v56 = vpack.c.bf16 %v1654_v23, %v1653_v16 }
 0x328   : > { %v1522_v51 = vpop.f32.mrf.mxu3  ;;  %v1389_v10 = vpop.f32.mrf.mxu2 }
 0x329   : > { %2360 = vmatmul.msk.bf16.gmra.mxu1 %vm1042_vm5, %v1681_v56  ;;  %v1587_v53 = vadd.f32 %v1522_v51, %v1385_v39  ;;  %v1390_v11 = vadd.f32 %v1389_v10, %v1262_v20 }
 0x32b   : > { %v1623_v13 = vadd.f32 %v3373_v7, %v1587_v53 }
 0x32d   : > { %v1655_v29 = vmax.f32 %v1623_v13, 0.0  ;;  %v1269_v3 = vpop.f32.mrf.mxu1 }
 0x330   : > { %v1524_v14 = vpop.f32.mrf.mxu3  ;;  %v1391_v18 = vpop.f32.mrf.mxu2 }
 0x331   : > { %v1588_v26 = vadd.f32 %v1524_v14, %v1387_v47  ;;  %v1392_v38 = vadd.f32 %v1391_v18, %v1264_v28  ;;  %v300_v28 = vld [vmem:[%s2827_s16] sm:$0xff]  }
 0x333   : > { %v1624_v27 = vadd.f32 %v3373_v7, %v1588_v26  ;;  %v3430_v26 = vld [vmem:[%s3578_s6] ss:$0 sm:$0xff] }
 0x335   : > { %v1656_v24 = vmax.f32 %v1624_v27, 0.0  ;;  %2346 = vmatmul.msk.bf16.gmra.mxu3 %vm1190_vm8, %v3254_v34  ;;  %2295 = vmatmul.msk.bf16.gmra.mxu2 %vm1190_vm8, %v3241_v8  ;;  %v1272_v46 = vpop.f32.mrf.mxu1 }
 0x337   : > { %v1682_v19 = vpack.c.bf16 %v1656_v24, %v1655_v29 }
 0x338   : > { %v1527_v44 = vpop.f32.mrf.mxu3  ;;  %v1394_v52 = vpop.f32.mrf.mxu2 }
 0x339   : > { %2361 = vmatmul.msk.bf16.gmra.mxu1 %vm1042_vm5, %v1682_v19  ;;  %v1589_v36 = vadd.f32 %v1527_v44, %v1390_v11  ;;  %v1395_v1 = vadd.f32 %v1394_v52, %v1267_v35  ;;  %v1850_v44 = vunpack.c.l.bf16 %v300_v28  ;;  %v1851_v11 = vunpack.c.h.bf16 %v300_v28 }
 0x33b   : > { %v1625_v54 = vadd.f32 %v3373_v7, %v1589_v36 }
 0x33d   : > { %v1657_v34 = vmax.f32 %v1625_v54, 0.0  ;;  %v1274_v23 = vpop.f32.mrf.mxu1 }
 0x340   : > { %v1529_v42 = vpop.f32.mrf.mxu3  ;;  %v1396_v5 = vpop.f32.mrf.mxu2 }
 0x341   : > { %v1590_v43 = vadd.f32 %v1529_v42, %v1392_v38  ;;  %v1397_v31 = vadd.f32 %v1396_v5, %v1269_v3 }
 0x343   : > { %v1626_v15 = vadd.f32 %v3373_v7, %v1590_v43 }
 0x345   : > { %v1658_v4 = vmax.f32 %v1626_v15, 0.0  ;;  %2347 = vmatmul.msk.bf16.gmra.mxu3 %vm1190_vm8, %v3257_v22 }
 0x347   : > { %v1683_v8 = vpack.c.bf16 %v1658_v4, %v1657_v34 }
 0x348   : > { %v1532_v49 = vpop.f32.mrf.mxu3  ;;  %v1399_v40 = vpop.f32.mrf.mxu2 }
 0x349   : > { %2362 = vmatmul.msk.bf16.gmra.mxu1 %vm1042_vm5, %v1683_v8  ;;  %v1591_v58 = vadd.f32 %v1532_v49, %v1395_v1  ;;  %v1400_v16 = vadd.f32 %v1399_v40, %v1272_v46 }
 0x34b   : > { %v1627_v21 = vadd.f32 %v3373_v7, %v1591_v58 }
 0x34d   : > { %v1659_v30 = vmax.f32 %v1627_v21, 0.0 }
 0x350   : > { %v1534_v60 = vpop.f32.mrf.mxu3  ;;  %v1401_v63 = vpop.f32.mrf.mxu2 }
 0x351   : > { %v1592_v33 = vadd.f32 %v1534_v60, %v1397_v31  ;;  %v1402_v51 = vadd.f32 %v1401_v63, %v1274_v23  ;;  %v302_v31 = vld [vmem:[%s2827_s16 + $0x8] sm:$0xff]  }
 0x352   : > { %v1852_v46 = vunpack.c.l.bf16 %v302_v31 }
 0x353   : > { %v1628_v2 = vadd.f32 %v3373_v7, %v1592_v33 }
 0x355   : > { %v1660_v62 = vmax.f32 %v1628_v2, 0.0 }
 0x357   : > { %v1684_v22 = vpack.c.bf16 %v1660_v62, %v1659_v30  ;;  %v1853_v30 = vunpack.c.h.bf16 %v302_v31 }
 0x358   : > { %v1537_v17 = vpop.f32.mrf.mxu3  ;;  %v1404_v6 = vpop.f32.mrf.mxu2 }
 0x359   : > { %2363 = vmatmul.msk.bf16.gmra.mxu1 %vm1042_vm5, %v1684_v22  ;;  %v1593_v56 = vadd.f32 %v1537_v17, %v1400_v16  ;;  %v1405_v52 = vadd.f32 %v1404_v6, %v3290_v41 }
 0x35b   : > { %v1629_v39 = vadd.f32 %v3373_v7, %v1593_v56 }
 0x35d   : > { %v1661_v14 = vmax.f32 %v1629_v39, 0.0 }
 0x360   : > { %v1539_v10 = vpop.f32.mrf.mxu3  ;;  %v1406_v20 = vpop.f32.mrf.mxu2 }
 0x361   : > { %v1594_v53 = vadd.f32 %v1539_v10, %v1402_v51  ;;  %v1407_v5 = vadd.f32 %v1406_v20, %v3295_v48 }
 0x363   : > { %v1630_v47 = vadd.f32 %v3373_v7, %v1594_v53 }
 0x365   : > { %v1662_v18 = vmax.f32 %v1630_v47, 0.0  ;;  %v1770_v13 = vpop.f32.mrf.mxu1 }
 0x366   : > { %v1771_v19 = vadd.f32 %v3430_v26, %v1770_v13  ;;  %v304_v13 = vld [vmem:[%s2827_s16 + $0x10] sm:$0xff]  }
 0x367   : > { %v1685_v27 = vpack.c.bf16 %v1662_v18, %v1661_v14 }
 0x368   : > { %v1542_v29 = vpop.f32.mrf.mxu3  ;;  %v1409_v24 = vpop.f32.mrf.mxu2  ;;  %v1882_v38 = vadd.f32 %v1850_v44, %v1771_v19  ;;  %v1854_v19 = vunpack.c.l.bf16 %v304_v13 }
 0x369   : > { %2364 = vmatmul.msk.bf16.gmra.mxu1 %vm1042_vm5, %v1685_v27  ;;  %v1595_v36 = vadd.f32 %v1542_v29, %v1405_v52  ;;  %v1410_v21 = vadd.f32 %v1409_v24, %v3311_v61  ;;  %v1855_v52 = vunpack.c.h.bf16 %v304_v13 }
 0x36a   : > { %v1914_v8 = vmax.f32 %v1882_v38, 0.0 }
 0x36b   : > { %v1631_v34 = vadd.f32 %v3373_v7, %v1595_v36 }
 0x36d   : > { %v1772_v35 = vpop.f32.mrf.mxu1  ;;  %v1663_v3 = vmax.f32 %v1631_v34, 0.0 }
 0x36e   : > { %v1773_v42 = vadd.f32 %v3430_v26, %v1772_v35 }
 0x370   : > { %v1883_v54 = vadd.f32 %v1851_v11, %v1773_v42  ;;  %v1544_v43 = vpop.f32.mrf.mxu3  ;;  %v1411_v15 = vpop.f32.mrf.mxu2 }
 0x371   : > { %v1596_v4 = vadd.f32 %v1544_v43, %v1407_v5  ;;  %v1412_v22 = vadd.f32 %v1411_v15, %v3318_v45 }
 0x372   : > { %v1915_v49 = vmax.f32 %v1883_v54, 0.0 }
 0x373   : > { %v1632_v41 = vadd.f32 %v3373_v7, %v1596_v4 }
 0x374   : > { %v2426_v40 = vpack.c.bf16 %v1915_v49, %v1914_v8 }
 0x375   : > { %v1664_v1 = vmax.f32 %v1632_v41, 0.0 }
 0x376   : > { %2427 = vst [vmem:[%s3442_s18] sm:$0xff] %v2426_v40   ;;  %v1775_v48 = vpop.f32.mrf.mxu1 }
 0x377   : > { %v1686_v58 = vpack.c.bf16 %v1664_v1, %v1663_v3  ;;  %v1776_v33 = vadd.f32 %v3430_v26, %v1775_v48  ;;  %v306_v3 = vld [vmem:[%s2827_s16 + $0x18] sm:$0xff]  }
 0x378   : > { %v1547_v60 = vpop.f32.mrf.mxu3  ;;  %v1414_v63 = vpop.f32.mrf.mxu2 }
 0x379   : > { %2365 = vmatmul.msk.bf16.gmra.mxu1 %vm1042_vm5, %v1686_v58  ;;  %v1597_v2 = vadd.f32 %v1547_v60, %v1410_v21  ;;  %v1884_v17 = vadd.f32 %v1852_v46, %v1776_v33  ;;  %v1415_v29 = vadd.f32 %v1414_v63, %v3324_v0  ;;  %v1856_v60 = vunpack.c.l.bf16 %v306_v3 }
 0x37a   : > { %v1857_v21 = vunpack.c.h.bf16 %v306_v3 }
 0x37b   : > { %v1633_v56 = vadd.f32 %v3373_v7, %v1597_v2  ;;  %v1916_v61 = vmax.f32 %v1884_v17, 0.0 }
 0x37d   : > { %v1665_v53 = vmax.f32 %v1633_v56, 0.0 }
 0x37e   : > { %v1777_v62 = vpop.f32.mrf.mxu1 }
 0x37f   : > { %v1778_v6 = vadd.f32 %v3430_v26, %v1777_v62 }
 0x380   : > { %v1549_v16 = vpop.f32.mrf.mxu3  ;;  %v1416_v23 = vpop.f32.mrf.mxu2 }
 0x381   : > { %v1885_v51 = vadd.f32 %v1853_v30, %v1778_v6  ;;  %v1598_v10 = vadd.f32 %v1549_v16, %v1412_v22  ;;  %v1417_v36 = vadd.f32 %v1416_v23, %v3334_v12 }
 0x383   : > { %v1917_v20 = vmax.f32 %v1885_v51, 0.0  ;;  %v1634_v39 = vadd.f32 %v3373_v7, %v1598_v10 }
 0x385   : > { %v2431_v47 = vpack.c.bf16 %v1917_v20, %v1916_v61  ;;  %v1666_v14 = vmax.f32 %v1634_v39, 0.0  ;;  %v308_v39 = vld [vmem:[%s2827_s16 + $0x20] sm:$0xff]  }
 0x386   : > { %v1780_v18 = vpop.f32.mrf.mxu1  ;;  %v1859_v13 = vunpack.c.h.bf16 %v308_v39 }
 0x387   : > { %2503 = vst [vmem:[%s3442_s18 + $0x8] sm:$0xff] %v2431_v47   ;;  %v1687_v45 = vpack.c.bf16 %v1666_v14, %v1665_v53  ;;  %v1781_v24 = vadd.f32 %v3430_v26, %v1780_v18  ;;  %v1858_v18 = vunpack.c.l.bf16 %v308_v39 }
 0x388   : > { %v1552_v27 = vpop.f32.mrf.mxu3  ;;  %v1419_v28 = vpop.f32.mrf.mxu2 }
 0x389   : > { %2366 = vmatmul.msk.bf16.gmra.mxu1 %vm1042_vm5, %v1687_v45  ;;  %v1599_v44 = vadd.f32 %v1552_v27, %v1415_v29  ;;  %v1886_v35 = vadd.f32 %v1854_v19, %v1781_v24  ;;  %v1420_v58 = vadd.f32 %v1419_v28, %v3343_v59 }
 0x38b   : > { %v1635_v54 = vadd.f32 %v3373_v7, %v1599_v44  ;;  %v1918_v0 = vmax.f32 %v1886_v35, 0.0 }
 0x38d   : > { %v1667_v8 = vmax.f32 %v1635_v54, 0.0 }
 0x38e   : > { %v1782_v11 = vpop.f32.mrf.mxu1 }
 0x38f   : > { %v1783_v38 = vadd.f32 %v3430_v26, %v1782_v11 }
 0x390   : > { %v1554_v42 = vpop.f32.mrf.mxu3  ;;  %v1421_v5 = vpop.f32.mrf.mxu2 }
 0x391   : > { %v1887_v43 = vadd.f32 %v1855_v52, %v1783_v38  ;;  %v1600_v15 = vadd.f32 %v1554_v42, %v1417_v36  ;;  %v1422_v46 = vadd.f32 %v1421_v5, %v3349_v37 }
 0x393   : > { %v1919_v34 = vmax.f32 %v1887_v43, 0.0  ;;  %v1636_v4 = vadd.f32 %v3373_v7, %v1600_v15 }
 0x395   : > { %v2436_v49 = vpack.c.bf16 %v1919_v34, %v1918_v0  ;;  %v1668_v41 = vmax.f32 %v1636_v4, 0.0  ;;  %v310_v0 = vld [vmem:[%s2827_s16 + $0x28] sm:$0xff]  }
 0x396   : > { %v1785_v40 = vpop.f32.mrf.mxu1 }
 0x397   : > { %2504 = vst [vmem:[%s3442_s18 + $0x10] sm:$0xff] %v2436_v49   ;;  %v1688_v12 = vpack.c.bf16 %v1668_v41, %v1667_v8  ;;  %v1786_v31 = vadd.f32 %v3430_v26, %v1785_v40  ;;  %v1860_v49 = vunpack.c.l.bf16 %v310_v0  ;;  %v1861_v40 = vunpack.c.h.bf16 %v310_v0 }
 0x398   : > { %v1557_v1 = vpop.f32.mrf.mxu3  ;;  %v1424_v48 = vpop.f32.mrf.mxu2 }
 0x399   : > { %2367 = vmatmul.msk.bf16.gmra.mxu1 %vm1042_vm5, %v1688_v12  ;;  %v1601_v63 = vadd.f32 %v1557_v1, %v1420_v58  ;;  %v1888_v2 = vadd.f32 %v1856_v60, %v1786_v31  ;;  %v1425_v47 = vadd.f32 %v1424_v48, %v3353_v9 }
 0x39b   : > { %v1637_v22 = vadd.f32 %v3373_v7, %v1601_v63  ;;  %v1920_v16 = vmax.f32 %v1888_v2, 0.0 }
 0x39d   : > { %v1669_v51 = vmax.f32 %v1637_v22, 0.0 }
 0x39e   : > { %v1787_v33 = vpop.f32.mrf.mxu1 }
 0x39f   : > { %v1788_v30 = vadd.f32 %v3430_v26, %v1787_v33 }
 0x3a0   : > { %v1559_v62 = vpop.f32.mrf.mxu3  ;;  %v1426_v56 = vpop.f32.mrf.mxu2 }
 0x3a1   : > { %v1889_v17 = vadd.f32 %v1857_v21, %v1788_v30  ;;  %v1602_v6 = vadd.f32 %v1559_v62, %v1422_v46  ;;  %v1427_v29 = vadd.f32 %v1426_v56, %v3359_v50 }
 0x3a3   : > { %v1921_v59 = vmax.f32 %v1889_v17, 0.0  ;;  %v1638_v23 = vadd.f32 %v3373_v7, %v1602_v6  ;;  %v312_v17 = vld [vmem:[%s2827_s16 + $0x30] sm:$0xff]  }
 0x3a5   : > { %v2441_v10 = vpack.c.bf16 %v1921_v59, %v1920_v16  ;;  %v1670_v61 = vmax.f32 %v1638_v23, 0.0  ;;  %v1862_v23 = vunpack.c.l.bf16 %v312_v17 }
 0x3a6   : > { %v1790_v20 = vpop.f32.mrf.mxu1 }
 0x3a7   : > { %2505 = vst [vmem:[%s3442_s18 + $0x18] sm:$0xff] %v2441_v10   ;;  %v1689_v37 = vpack.c.bf16 %v1670_v61, %v1669_v51  ;;  %v1791_v14 = vadd.f32 %v3430_v26, %v1790_v20  ;;  %v1863_v10 = vunpack.c.h.bf16 %v312_v17 }
 0x3a8   : > { %v1562_v53 = vpop.f32.mrf.mxu3  ;;  %v1429_v27 = vpop.f32.mrf.mxu2 }
 0x3a9   : > { %2368 = vmatmul.msk.bf16.gmra.mxu1 %vm1042_vm5, %v1689_v37  ;;  %v1603_v45 = vadd.f32 %v1562_v53, %v1425_v47  ;;  %v1890_v24 = vadd.f32 %v1858_v18, %v1791_v14  ;;  %v1430_v4 = vadd.f32 %v1429_v27, %v3355_v32 }
 0x3ab   : > { %v1639_v52 = vadd.f32 %v3373_v7, %v1603_v45  ;;  %v1922_v9 = vmax.f32 %v1890_v24, 0.0 }
 0x3ad   : > { %v1671_v42 = vmax.f32 %v1639_v52, 0.0 }
 0x3ae   : > { %v1792_v28 = vpop.f32.mrf.mxu1 }
 0x3af   : > { %v1793_v19 = vadd.f32 %v3430_v26, %v1792_v28 }
 0x3b0   : > { %v1564_v44 = vpop.f32.mrf.mxu3  ;;  %v1431_v50 = vpop.f32.mrf.mxu2 }
 0x3b1   : > { %v1891_v11 = vadd.f32 %v1859_v13, %v1793_v19  ;;  %v1604_v36 = vadd.f32 %v1564_v44, %v1427_v29  ;;  %v1432_v3 = vadd.f32 %v1431_v50, %v3357_v55  ;;  %v314_v19 = vld [vmem:[%s2827_s16 + $0x38] sm:$0xff]  }
 0x3b2   : > { %v1864_v52 = vunpack.c.l.bf16 %v314_v19 }
 0x3b3   : > { %v1923_v35 = vmax.f32 %v1891_v11, 0.0  ;;  %v1640_v38 = vadd.f32 %v3373_v7, %v1604_v36  ;;  %v1865_v11 = vunpack.c.h.bf16 %v314_v19 }
 0x3b5   : > { %v2446_v5 = vpack.c.bf16 %v1923_v35, %v1922_v9  ;;  %v1672_v54 = vmax.f32 %v1640_v38, 0.0 }
 0x3b6   : > { %v1795_v43 = vpop.f32.mrf.mxu1 }
 0x3b7   : > { %2506 = vst [vmem:[%s3442_s18 + $0x20] sm:$0xff] %v2446_v5   ;;  %v1690_v15 = vpack.c.bf16 %v1672_v54, %v1671_v42  ;;  %v1796_v8 = vadd.f32 %v3430_v26, %v1795_v43  ;;  %v316_v43 = vld [vmem:[%s2827_s16 + $0x40] sm:$0xff]  }
 0x3b8   : > { %v1567_v34 = vpop.f32.mrf.mxu3  ;;  %v1434_v21 = vpop.f32.mrf.mxu2  ;;  %v1866_v50 = vunpack.c.l.bf16 %v316_v43  ;;  %v1867_v0 = vunpack.c.h.bf16 %v316_v43 }
 0x3b9   : > { %2369 = vmatmul.msk.bf16.gmra.mxu1 %vm1042_vm5, %v1690_v15  ;;  %v1605_v41 = vadd.f32 %v1567_v34, %v1430_v4  ;;  %v1892_v1 = vadd.f32 %v1860_v49, %v1796_v8  ;;  %v1435_v16 = vadd.f32 %v1434_v21, %v3363_v57 }
 0x3bb   : > { %v1641_v31 = vadd.f32 %v3373_v7, %v1605_v41  ;;  %v1924_v32 = vmax.f32 %v1892_v1, 0.0  ;;  %v318_v1 = vld [vmem:[%s2827_s16 + $0x48] sm:$0xff]  }
 0x3bd   : > { %v1673_v2 = vmax.f32 %v1641_v31, 0.0  ;;  %v1869_v31 = vunpack.c.h.bf16 %v318_v1 }
 0x3be   : > { %v1797_v12 = vpop.f32.mrf.mxu1 }
 0x3bf   : > { %v1798_v48 = vadd.f32 %v3430_v26, %v1797_v12 }
 0x3c0   : > { %v1569_v58 = vpop.f32.mrf.mxu3  ;;  %v1436_v56 = vpop.f32.mrf.mxu2 }
 0x3c1   : > { %v1893_v60 = vadd.f32 %v1861_v40, %v1798_v48  ;;  %v1606_v63 = vadd.f32 %v1569_v58, %v1432_v3  ;;  %v1437_v20 = vadd.f32 %v1436_v56, %v3365_v25  ;;  %v1868_v58 = vunpack.c.l.bf16 %v318_v1 }
 0x3c3   : > { %v1925_v33 = vmax.f32 %v1893_v60, 0.0  ;;  %v1642_v46 = vadd.f32 %v3373_v7, %v1606_v63 }
 0x3c5   : > { %v2451_v30 = vpack.c.bf16 %v1925_v33, %v1924_v32  ;;  %v1674_v62 = vmax.f32 %v1642_v46, 0.0 }
 0x3c6   : > { %v1800_v22 = vpop.f32.mrf.mxu1 }
 0x3c7   : > { %2507 = vst [vmem:[%s3442_s18 + $0x28] sm:$0xff] %v2451_v30   ;;  %v1691_v55 = vpack.c.bf16 %v1674_v62, %v1673_v2  ;;  %v1801_v59 = vadd.f32 %v3430_v26, %v1800_v22  ;;  %v320_v62 = vld [vmem:[%s2827_s16 + $0x50] sm:$0xff]  }
 0x3c8   : > { %v1572_v6 = vpop.f32.mrf.mxu3  ;;  %v1871_v17 = vunpack.c.h.bf16 %v320_v62 }
 0x3c9   : > { %2370 = vmatmul.msk.bf16.gmra.mxu1 %vm1042_vm5, %v1691_v55  ;;  %v1607_v51 = vadd.f32 %v1572_v6, %v1435_v16  ;;  %v1894_v37 = vadd.f32 %v1862_v23, %v1801_v59  ;;  %v1870_v55 = vunpack.c.l.bf16 %v320_v62 }
 0x3cb   : > { %v1643_v47 = vadd.f32 %v3373_v7, %v1607_v51  ;;  %v1926_v57 = vmax.f32 %v1894_v37, 0.0 }
 0x3cd   : > { %v1675_v27 = vmax.f32 %v1643_v47, 0.0 }
 0x3ce   : > { %v1802_v61 = vpop.f32.mrf.mxu1 }
 0x3cf   : > { %v1803_v39 = vadd.f32 %v3430_v26, %v1802_v61 }
 0x3d0   : > { %v1574_v53 = vpop.f32.mrf.mxu3 }
 0x3d1   : > { %v1895_v14 = vadd.f32 %v1863_v10, %v1803_v39  ;;  %v1608_v18 = vadd.f32 %v1574_v53, %v1437_v20  ;;  %v322_v20 = vld [vmem:[%s2827_s16 + $0x58] sm:$0xff]  }
 0x3d2   : > { %v1872_v39 = vunpack.c.l.bf16 %v322_v20  ;;  %v1873_v53 = vunpack.c.h.bf16 %v322_v20 }
 0x3d3   : > { %v1927_v45 = vmax.f32 %v1895_v14, 0.0  ;;  %v1644_v13 = vadd.f32 %v3373_v7, %v1608_v18 }
 0x3d5   : > { %v2456_v28 = vpack.c.bf16 %v1927_v45, %v1926_v57  ;;  %v1676_v29 = vmax.f32 %v1644_v13, 0.0 }
 0x3d6   : > { %v1805_v24 = vpop.f32.mrf.mxu1 }
 0x3d7   : > { %2508 = vst [vmem:[%s3442_s18 + $0x30] sm:$0xff] %v2456_v28   ;;  %v1692_v25 = vpack.c.bf16 %v1676_v29, %v1675_v27  ;;  %v1806_v44 = vadd.f32 %v3430_v26, %v1805_v24  ;;  %v324_v29 = vld [vmem:[%s2827_s16 + $0x60] sm:$0xff]  }
 0x3d8   : > { %v1875_v19 = vunpack.c.h.bf16 %v324_v29 }
 0x3d9   : > { %2371 = vmatmul.msk.bf16.gmra.mxu1 %vm1042_vm5, %v1692_v25  ;;  %v1896_v9 = vadd.f32 %v1864_v52, %v1806_v44  ;;  %v1874_v25 = vunpack.c.l.bf16 %v324_v29 }
 0x3db   : > { %v1928_v38 = vmax.f32 %v1896_v9, 0.0 }
 0x3de   : > { %v1807_v36 = vpop.f32.mrf.mxu1 }
 0x3df   : > { %v1808_v35 = vadd.f32 %v3430_v26, %v1807_v36 }
 0x3e1   : > { %v1897_v7 = vadd.f32 %v1865_v11, %v1808_v35 }
 0x3e3   : > { %v1929_v42 = vmax.f32 %v1897_v7, 0.0 }
 0x3e5   : > { %v2461_v5 = vpack.c.bf16 %v1929_v42, %v1928_v38  ;;  %v326_v42 = vld [vmem:[%s2827_s16 + $0x68] sm:$0xff]  }
 0x3e6   : > { %v1810_v54 = vpop.f32.mrf.mxu1  ;;  %v1877_v43 = vunpack.c.h.bf16 %v326_v42 }
 0x3e7   : > { %2509 = vst [vmem:[%s3442_s18 + $0x38] sm:$0xff] %v2461_v5   ;;  %v1811_v15 = vadd.f32 %v3430_v26, %v1810_v54  ;;  %v1876_v54 = vunpack.c.l.bf16 %v326_v42 }
 0x3e9   : > { %v1898_v4 = vadd.f32 %v1866_v50, %v1811_v15 }
 0x3eb   : > { %v1930_v41 = vmax.f32 %v1898_v4, 0.0 }
 0x3ee   : > { %v1812_v34 = vpop.f32.mrf.mxu1 }
 0x3ef   : > { %v1813_v8 = vadd.f32 %v3430_v26, %v1812_v34 }
 0x3f1   : > { %v1899_v49 = vadd.f32 %v1867_v0, %v1813_v8 }
 0x3f3   : > { %v1931_v40 = vmax.f32 %v1899_v49, 0.0 }
 0x3f5   : > { %v2466_v12 = vpack.c.bf16 %v1931_v40, %v1930_v41  ;;  %v328_v40 = vld [vmem:[%s2827_s16 + $0x70] sm:$0xff]  }
 0x3f6   : > { %v1815_v3 = vpop.f32.mrf.mxu1  ;;  %v1879_v1 = vunpack.c.h.bf16 %v328_v40 }
 0x3f7   : > { %2510 = vst [vmem:[%s3442_s18 + $0x40] sm:$0xff] %v2466_v12   ;;  %v1816_v48 = vadd.f32 %v3430_v26, %v1815_v3  ;;  %v1878_v3 = vunpack.c.l.bf16 %v328_v40 }
 0x3f9   : > { %v1900_v63 = vadd.f32 %v1868_v58, %v1816_v48 }
 0x3fb   : > { %v1932_v33 = vmax.f32 %v1900_v63, 0.0 }
 0x3fe   : > { %v1817_v60 = vpop.f32.mrf.mxu1 }
 0x3ff   : > { %v1818_v21 = vadd.f32 %v3430_v26, %v1817_v60 }
 0x401   : > { %v1901_v32 = vadd.f32 %v1869_v31, %v1818_v21 }
 0x403   : > { %v1933_v46 = vmax.f32 %v1901_v32, 0.0 }
 0x405   : > { %v2471_v2 = vpack.c.bf16 %v1933_v46, %v1932_v33  ;;  %v330_v46 = vld [vmem:[%s2827_s16 + $0x78] sm:$0xff]   ;;  %s2635_s16 = sshra.s32 %s2026_s29, 4  ;;  %s2636_s16 = int_to_ptr.hbm [resolvable:$true] %s2635_s16 }
 0x406   : > { %v1820_v30 = vpop.f32.mrf.mxu1  ;;  %v1881_v62 = vunpack.c.h.bf16 %v330_v46  ;;  %s2637_s8 = scalar_lea.hbm %s2636_s16, 128  ;;  %p2642_p0 = scmp.lt.s32.totalorder %s2636_s16, %s3579_s7 }
 0x407   : > { %2511 = vst [vmem:[%s3442_s18 + $0x48] sm:$0xff] %v2471_v2   ;;  %v1821_v22 = vadd.f32 %v3430_v26, %v1820_v30  ;;  %v1880_v30 = vunpack.c.l.bf16 %v330_v46  ;;  %p2638_p6 = scmp.ne.s32.totalorder %s2636_s16, %s2637_s8  ;;  %p2643_p1 = scmp.lt.s32.totalorder %s2641_s11, %s2637_s8 }
 0x409   : > { %v1902_v16 = vadd.f32 %v1870_v55, %v1821_v22  ;;  %p2639_p9 = pnand %p2638_p6, %p2785_p11  ;;  %p2644_p3 = por %p2643_p1, %p2642_p0 }
 0x40b   : > { %v1934_v56 = vmax.f32 %v1902_v16, 0.0  ;;  %p2640_p13 = pneg %p2639_p9 }
 0x40d   : > { %p2645_p4 = pnand %p2644_p3, %p2640_p13 }
 0x40e   : > { %v1822_v6 = vpop.f32.mrf.mxu1 }
 0x40f   : > { %v1823_v59 = vadd.f32 %v3430_v26, %v1822_v6 }
 0x411   : > { %v1903_v23 = vadd.f32 %v1871_v17, %v1823_v59 }
 0x413   : > { %v1935_v51 = vmax.f32 %v1903_v23, 0.0 }
 0x415   : > { %v2476_v10 = vpack.c.bf16 %v1935_v51, %v1934_v56 }
 0x416   : > { %v1825_v61 = vpop.f32.mrf.mxu1 }
 0x417   : > { %2512 = vst [vmem:[%s3442_s18 + $0x50] sm:$0xff] %v2476_v10   ;;  %v1826_v37 = vadd.f32 %v3430_v26, %v1825_v61 }
 0x419   : > { %v1904_v14 = vadd.f32 %v1872_v39, %v1826_v37 }
 0x41b   : > { %v1936_v45 = vmax.f32 %v1904_v14, 0.0 }
 0x41e   : > { %v1827_v47 = vpop.f32.mrf.mxu1 }
 0x41f   : > { %v1828_v18 = vadd.f32 %v3430_v26, %v1827_v47 }
 0x421   : > { %v1905_v57 = vadd.f32 %v1873_v53, %v1828_v18 }
 0x423   : > { %v1937_v13 = vmax.f32 %v1905_v57, 0.0 }
 0x425   : > { %v2481_v27 = vpack.c.bf16 %v1937_v13, %v1936_v45 }
 0x426   : > { %v1830_v28 = vpop.f32.mrf.mxu1 }
 0x427   : > { %2513 = vst [vmem:[%s3442_s18 + $0x58] sm:$0xff] %v2481_v27   ;;  %v1831_v24 = vadd.f32 %v3430_v26, %v1830_v28 }
 0x429   : > { %v1906_v52 = vadd.f32 %v1874_v25, %v1831_v24 }
 0x42b   : > { %v1938_v9 = vmax.f32 %v1906_v52, 0.0 }
 0x42e   : > { %v1832_v44 = vpop.f32.mrf.mxu1 }
 0x42f   : > { %v1833_v11 = vadd.f32 %v3430_v26, %v1832_v44 }
 0x431   : > { %v1907_v36 = vadd.f32 %v1875_v19, %v1833_v11 }
 0x433   : > { %v1939_v35 = vmax.f32 %v1907_v36, 0.0 }
 0x435   : > { %v2486_v7 = vpack.c.bf16 %v1939_v35, %v1938_v9 }
 0x436   : > { %v1835_v38 = vpop.f32.mrf.mxu1 }
 0x437   : > { %2514 = vst [vmem:[%s3442_s18 + $0x60] sm:$0xff] %v2486_v7   ;;  %v1836_v5 = vadd.f32 %v3430_v26, %v1835_v38 }
 0x439   : > { %v1908_v50 = vadd.f32 %v1876_v54, %v1836_v5 }
 0x43b   : > { %v1940_v4 = vmax.f32 %v1908_v50, 0.0 }
 0x43e   : > { %v1837_v15 = vpop.f32.mrf.mxu1 }
 0x43f   : > { %v1838_v0 = vadd.f32 %v3430_v26, %v1837_v15 }
 0x441   : > { %v1909_v34 = vadd.f32 %v1877_v43, %v1838_v0 }
 0x443   : > { %v1941_v8 = vmax.f32 %v1909_v34, 0.0 }
 0x445   : > { %v2491_v49 = vpack.c.bf16 %v1941_v8, %v1940_v4 }
 0x446   : > { %v1840_v41 = vpop.f32.mrf.mxu1 }
 0x447   : > { %2515 = vst [vmem:[%s3442_s18 + $0x68] sm:$0xff] %v2491_v49   ;;  %v1841_v12 = vadd.f32 %v3430_v26, %v1840_v41 }
 0x449   : > { %v1910_v58 = vadd.f32 %v1878_v3, %v1841_v12 }
 0x44b   : > { %v1942_v63 = vmax.f32 %v1910_v58, 0.0 }
 0x44e   : > { %v1842_v48 = vpop.f32.mrf.mxu1 }
 0x44f   : > { %v1843_v31 = vadd.f32 %v3430_v26, %v1842_v48 }
 0x451   : > { %v1911_v60 = vadd.f32 %v1879_v1, %v1843_v31 }
 0x453   : > { %v1943_v21 = vmax.f32 %v1911_v60, 0.0 }
 0x455   : > { %v2496_v32 = vpack.c.bf16 %v1943_v21, %v1942_v63 }
 0x456   : > { %v1845_v33 = vpop.f32.mrf.mxu1 }
 0x457   : > { %2516 = vst [vmem:[%s3442_s18 + $0x70] sm:$0xff] %v2496_v32   ;;  %v1846_v2 = vadd.f32 %v3430_v26, %v1845_v33 }
 0x459   : > { %v1912_v55 = vadd.f32 %v1880_v30, %v1846_v2 }
 0x45b   : > { %v1944_v16 = vmax.f32 %v1912_v55, 0.0 }
 0x45e   : > { %v1847_v22 = vpop.f32.mrf.mxu1 }
 0x45f   : > { %v1848_v17 = vadd.f32 %v3430_v26, %v1847_v22 }
 0x461   : > { %v1913_v6 = vadd.f32 %v1881_v62, %v1848_v17 }
 0x463   : > { %v1945_v59 = vmax.f32 %v1913_v6, 0.0 }
 0x465   : > { %v2501_v23 = vpack.c.bf16 %v1945_v59, %v1944_v16 }
 0x467   : > { %2517 = vst [vmem:[%s3442_s18 + $0x78] sm:$0xff] %v2501_v23  }
 0x468   : > { %2648 = shalt.err (!%p2645_p4)
}
 0x469   : > { %s2694_s22 = smov 4  }
 0x46a   : > { %2538 = dma.vmem_to_hbm [thread:$0]  (%p2785_p11), %s2024_s23, 2048, %s2026_s29, %s2011_s28, %s2692_s9, %s2692_s9, %s2694_s22  }
 0x46b PF: > { %s2040_s18 = sand.u32 1, %s2675_s24   ;;  %p3590_p7 = scmp.ge.s32.totalorder %s2687_s27, 2 }
 0x46c   : > { %s2041_s19 = scalar_lea.sflag [#allocation4], %s2040_s18 }
 0x46d   : > { %p2545_p5 = pnand %p3590_p7, %p2789_p12 }
 0x46f   : > { %p2546_p8 = pneg %p2545_p5 }
 0x471   : > { %2670 = dma.done.wait (%p2546_p8), %s2041_s19, 2048  }
 0x472   : > { %2672 = vsyncadd (%p2546_p8), %s2041_s19, 4294965248  ;;  %s3591_s15 = sld [smem:[#allocation8_spill]]  ;;  %p20_p10 = scmp.ge.s32.totalorder %s2760_s30, 4  }
 0x473   : > { %s3592_s24 = smov %s2679_s25  ;;  %s3593_s25 = smov %s2683_s26 }
 0x474   : > { %s3595_s27 = smov %s2760_s30  ;;  %22 = sbr.rel (!%p20_p10) target bundleno = 5 (0x5), region = 95 }
 0x478   : > { %s3594_s26 = smov %s3591_s15 }
 0x479   :  { %2047 = vsyncpa [#allocation3], 1 }
 0x47a   :  { %2049 = vsyncpa [#allocation3 + $0x1], 1 }
 0x47b   :  { %2050 = vsyncpa [#allocation4], 1 }
 0x47c   :  { %2052 = vsyncpa [#allocation4 + $0x1], 1 }

</bundles_post_ra>
